<compile_context>
chip_gen: v5e
topology: v5e:2x2
jax: 0.10.0
libtpu: 0.0.40
codegen_flags: <defaults>
</compile_context>

<pallas_src>
import functools

import jax
import jax.numpy as jnp
from jax.experimental import pallas as pl
from jax.experimental.pallas import tpu as pltpu  # noqa: F401  (TPU backend)

# ---- small, module-consistent shapes -------------------------------------
B = 2          # batch
T = 8          # sequence length
D = 32         # hidden size (args.d)
H = 2          # num attention heads (args.num_heads)
HD = D // H    # head dim
L = 2          # number of transformer blocks (args.l)
FF = 4 * D     # GPT-2 MLP inner size
V = 128        # vocab size (kept small; real GPT-2 uses 50257)
MAXPOS = 16    # positional embedding table size
EPS = 1e-5


# ---------------------------------------------------------------------------
# helpers (used both in-kernel and in the pure-JAX reference)
# ---------------------------------------------------------------------------
def _layernorm(x, g, b):
    mu = jnp.mean(x, axis=-1, keepdims=True)
    var = jnp.mean(jnp.square(x - mu), axis=-1, keepdims=True)
    return (x - mu) * jax.lax.rsqrt(var + EPS) * g + b


def _gelu(x):
    # GPT-2 "gelu_new" (tanh approximation)
    return 0.5 * x * (1.0 + jnp.tanh(0.7978845608028654 * (x + 0.044715 * x * x * x)))


# ---------------------------------------------------------------------------
# Fused Pallas kernel: L transformer blocks + final LN + lm_head.
# Single invocation (no grid) — everything fits comfortably in VMEM.
# ---------------------------------------------------------------------------
def fused_forward_kernel(x_ref, bias_ref,
                         ln1g_ref, ln1b_ref, wqkv_ref, bqkv_ref, wo_ref, bo_ref,
                         ln2g_ref, ln2b_ref, w1_ref, b1_ref, w2_ref, b2_ref,
                         lnfg_ref, lnfb_ref, wlm_ref,
                         out_ref):
    x = x_ref[...].reshape(B * T, D)          # (BT, D) f32, resident for all layers
    bias = bias_ref[...]                      # (B, T, T) merged causal + pad bias
    scale = 1.0 / jnp.sqrt(jnp.float32(HD))

    for l in range(L):                        # static unroll over layers
        # ---- self-attention (pre-LN) ----
        h = _layernorm(x, ln1g_ref[l], ln1b_ref[l])
        qkv = jnp.dot(h.astype(jnp.bfloat16), wqkv_ref[l],
                      preferred_element_type=jnp.float32) + bqkv_ref[l]   # (BT, 3D)
        qkv3 = qkv.reshape(B, T, 3 * D)
        q = qkv3[:, :, 0 * D:1 * D] * scale                               # scale folded once
        k = qkv3[:, :, 1 * D:2 * D]
        v = qkv3[:, :, 2 * D:3 * D]

        wo_l = wo_ref[l]                                                  # (D, D) bf16
        attn = jnp.zeros((B * T, D), jnp.float32)
        for hh in range(H):                   # static unroll over heads (batched over B)
            qh = q[:, :, hh * HD:(hh + 1) * HD]                           # (B, T, HD)
            kh = k[:, :, hh * HD:(hh + 1) * HD]
            vh = v[:, :, hh * HD:(hh + 1) * HD]
            s = jnp.einsum("bqd,bkd->bqk", qh, kh,
                           preferred_element_type=jnp.float32) + bias     # (B, T, T)
            s = s - jnp.max(s, axis=-1, keepdims=True)
            p = jnp.exp(s)
            p = p * pl.reciprocal(jnp.sum(p, axis=-1, keepdims=True), approx=True)
            ctx = jnp.einsum("bqk,bkd->bqd", p.astype(jnp.bfloat16),
                             vh.astype(jnp.bfloat16),
                             preferred_element_type=jnp.float32)          # (B, T, HD)
            # accumulate directly through this head's slice of Wo (no concat)
            attn = attn + jnp.dot(ctx.reshape(B * T, HD).astype(jnp.bfloat16),
                                  wo_l[hh * HD:(hh + 1) * HD, :],
                                  preferred_element_type=jnp.float32)
        x = x + attn + bo_ref[l]

        # ---- MLP (pre-LN) ----
        h2 = _layernorm(x, ln2g_ref[l], ln2b_ref[l])
        m = _gelu(jnp.dot(h2.astype(jnp.bfloat16), w1_ref[l],
                          preferred_element_type=jnp.float32) + b1_ref[l])
        x = x + jnp.dot(m.astype(jnp.bfloat16), w2_ref[l],
                        preferred_element_type=jnp.float32) + b2_ref[l]

    # ---- final LN + lm_head (no bias), output last dim V=128 is lane-dense ----
    hf = _layernorm(x, lnfg_ref[...], lnfb_ref[...])
    logits = jnp.dot(hf.astype(jnp.bfloat16), wlm_ref[...],
                     preferred_element_type=jnp.float32)                  # (BT, V)
    out_ref[...] = logits.reshape(B, T, V)


# ---------------------------------------------------------------------------
# forward = SonnetGPT.forward (eval mode: F.dropout(p=0.2, training=False) is
# the identity, so it is omitted).
# ---------------------------------------------------------------------------
def sonnet_gpt_forward(params, input_ids, attention_mask):
    # embedding gather (glue, plain JAX)
    x = (params["wte"][input_ids] + params["wpe"][:T][None, :, :]).astype(jnp.float32)
    # merged causal + padding additive bias, built once outside the kernel
    pad = (1.0 - attention_mask.astype(jnp.float32)) * -1e9               # (B, T)
    row = jnp.arange(T)[:, None]
    col = jnp.arange(T)[None, :]
    causal = jnp.where(col <= row, 0.0, -1e9).astype(jnp.float32)         # (T, T)
    bias = causal[None, :, :] + pad[:, None, :]                           # (B, T, T)

    # TODO(synk): dropout skipped (inference / training=False semantics).
    return pl.pallas_call(
        fused_forward_kernel,
        out_shape=jax.ShapeDtypeStruct((B, T, V), jnp.float32),
    )(x, bias,
      params["ln1_g"], params["ln1_b"], params["w_qkv"], params["b_qkv"],
      params["w_o"], params["b_o"], params["ln2_g"], params["ln2_b"],
      params["w1"], params["b1"], params["w2"], params["b2"],
      params["lnf_g"], params["lnf_b"], params["w_lm"])


# ---------------------------------------------------------------------------
# deterministic parameter init (shapes implied by SonnetGPT.__init__),
# weights stacked over layers, matmul weights stored in bf16.
# ---------------------------------------------------------------------------
def init_params(seed=0):
    key = jax.random.PRNGKey(seed)
    keys = iter(jax.random.split(key, 64))

    def nrm(shape, scale=0.02, dtype=jnp.float32):
        return (scale * jax.random.normal(next(keys), shape)).astype(dtype)

    bf16 = jnp.bfloat16
    return {
        "wte": nrm((V, D)),
        "wpe": nrm((MAXPOS, D)),
        "ln1_g": jnp.ones((L, 1, D), jnp.float32),
        "ln1_b": jnp.zeros((L, 1, D), jnp.float32),
        "w_qkv": nrm((L, D, 3 * D), dtype=bf16),      # fused [Wq|Wk|Wv]
        "b_qkv": jnp.zeros((L, 1, 3 * D), jnp.float32),
        "w_o": nrm((L, D, D), dtype=bf16),
        "b_o": jnp.zeros((L, 1, D), jnp.float32),
        "ln2_g": jnp.ones((L, 1, D), jnp.float32),
        "ln2_b": jnp.zeros((L, 1, D), jnp.float32),
        "w1": nrm((L, D, FF), dtype=bf16),
        "b1": jnp.zeros((L, 1, FF), jnp.float32),
        "w2": nrm((L, FF, D), dtype=bf16),
        "b2": jnp.zeros((L, 1, D), jnp.float32),
        "lnf_g": jnp.ones((1, D), jnp.float32),
        "lnf_b": jnp.zeros((1, D), jnp.float32),
        "w_lm": nrm((D, V), dtype=bf16),              # nn.Linear(d, vocab, bias=False)
    }


# ---------------------------------------------------------------------------
# pure-JAX reference (f32 math on the same weight values)
# ---------------------------------------------------------------------------
def reference_forward(params, input_ids, attention_mask):
    x = (params["wte"][input_ids] + params["wpe"][:T][None, :, :]).astype(jnp.float32)
    pad = ((1.0 - attention_mask.astype(jnp.float32)) * -1e9)[:, None, None, :]
    row = jnp.arange(T)[:, None]
    col = jnp.arange(T)[None, :]
    causal = jnp.where(col <= row, 0.0, -1e9)[None, None, :, :]
    for l in range(L):
        h = _layernorm(x, params["ln1_g"][l, 0], params["ln1_b"][l, 0])
        qkv = h @ params["w_qkv"][l].astype(jnp.float32) + params["b_qkv"][l, 0]
        q, k, v = jnp.split(qkv, 3, axis=-1)
        q = q.reshape(B, T, H, HD).transpose(0, 2, 1, 3)
        k = k.reshape(B, T, H, HD).transpose(0, 2, 1, 3)
        v = v.reshape(B, T, H, HD).transpose(0, 2, 1, 3)
        s = jnp.einsum("bhtd,bhsd->bhts", q, k) / jnp.sqrt(jnp.float32(HD))
        s = s + causal + pad
        p = jax.nn.softmax(s, axis=-1)
        o = jnp.einsum("bhts,bhsd->bhtd", p, v).transpose(0, 2, 1, 3).reshape(B, T, D)
        x = x + o @ params["w_o"][l].astype(jnp.float32) + params["b_o"][l, 0]
        h2 = _layernorm(x, params["ln2_g"][l, 0], params["ln2_b"][l, 0])
        x = x + _gelu(h2 @ params["w1"][l].astype(jnp.float32) + params["b1"][l, 0]) \
              @ params["w2"][l].astype(jnp.float32) + params["b2"][l, 0]
    h = _layernorm(x, params["lnf_g"][0], params["lnf_b"][0])
    return h @ params["w_lm"].astype(jnp.float32)


# ---------------------------------------------------------------------------
if __name__ == "__main__":
    params = init_params(seed=0)

    key = jax.random.PRNGKey(0)
    k_ids, _ = jax.random.split(key)
    input_ids = jax.random.randint(k_ids, (B, T), 0, V, dtype=jnp.int32)
    attention_mask = jnp.ones((B, T), dtype=jnp.int32)

    fwd = jax.jit(functools.partial(sonnet_gpt_forward, params))
    logits = jax.block_until_ready(fwd(input_ids, attention_mask))

    ref = reference_forward(params, input_ids, attention_mask)
    max_err = float(jnp.max(jnp.abs(logits - ref)))
    assert logits.shape == (B, T, V), logits.shape
    assert max_err < 2e-2, f"mismatch vs reference: {max_err}"

    print("KERNEL_OK")
</pallas_src>

<mosaic_0001>
module attributes {stable_mosaic.version = 11 : i64} {
  func.func @fused_forward_kernel(%arg0: memref<2x8x32xf32, #tpu.memory_space<vmem>>, %arg1: memref<2x8x8xf32, #tpu.memory_space<vmem>>, %arg2: memref<2x1x32xf32, #tpu.memory_space<vmem>>, %arg3: memref<2x1x32xf32, #tpu.memory_space<vmem>>, %arg4: memref<2x32x96xbf16, #tpu.memory_space<vmem>>, %arg5: memref<2x1x96xf32, #tpu.memory_space<vmem>>, %arg6: memref<2x32x32xbf16, #tpu.memory_space<vmem>>, %arg7: memref<2x1x32xf32, #tpu.memory_space<vmem>>, %arg8: memref<2x1x32xf32, #tpu.memory_space<vmem>>, %arg9: memref<2x1x32xf32, #tpu.memory_space<vmem>>, %arg10: memref<2x32x128xbf16, #tpu.memory_space<vmem>>, %arg11: memref<2x1x128xf32, #tpu.memory_space<vmem>>, %arg12: memref<2x128x32xbf16, #tpu.memory_space<vmem>>, %arg13: memref<2x1x32xf32, #tpu.memory_space<vmem>>, %arg14: memref<1x32xf32, #tpu.memory_space<vmem>>, %arg15: memref<1x32xf32, #tpu.memory_space<vmem>>, %arg16: memref<32x128xbf16, #tpu.memory_space<vmem>>, %arg17: memref<2x8x128xf32, #tpu.memory_space<vmem>>) attributes {dimension_semantics = [], scalar_prefetch = 0 : i64, scratch_operands = 0 : i64, tpu.core_type = #tpu.core_type<tc>} {
    %c0 = arith.constant 0 : index
    %c0_0 = arith.constant 0 : index
    %c0_1 = arith.constant 0 : index
    %0 = vector.load %arg0[%c0, %c0_0, %c0_1] : memref<2x8x32xf32, #tpu.memory_space<vmem>>, vector<2x8x32xf32>
    %1 = vector.shape_cast %0 : vector<2x8x32xf32> to vector<16x32xf32>
    %c0_2 = arith.constant 0 : index
    %c0_3 = arith.constant 0 : index
    %c0_4 = arith.constant 0 : index
    %2 = vector.load %arg1[%c0_2, %c0_3, %c0_4] : memref<2x8x8xf32, #tpu.memory_space<vmem>>, vector<2x8x8xf32>
    %cst = arith.constant 1.600000e+01 : f32
    %3 = math.sqrt %cst : f32
    %cst_5 = arith.constant 1.000000e+00 : f32
    %4 = arith.divf %cst_5, %3 : f32
    %c0_6 = arith.constant 0 : index
    %c0_7 = arith.constant 0 : index
    %c0_8 = arith.constant 0 : index
    %5 = vector.load %arg2[%c0_6, %c0_7, %c0_8] : memref<2x1x32xf32, #tpu.memory_space<vmem>>, vector<1x1x32xf32>
    %6 = vector.shape_cast %5 : vector<1x1x32xf32> to vector<1x32xf32>
    %c0_9 = arith.constant 0 : index
    %c0_10 = arith.constant 0 : index
    %c0_11 = arith.constant 0 : index
    %7 = vector.load %arg3[%c0_9, %c0_10, %c0_11] : memref<2x1x32xf32, #tpu.memory_space<vmem>>, vector<1x1x32xf32>
    %8 = vector.shape_cast %7 : vector<1x1x32xf32> to vector<1x32xf32>
    %cst_12 = arith.constant dense<0.000000e+00> : vector<16xf32>
    %9 = vector.multi_reduction <add>, %1, %cst_12 [1] : vector<16x32xf32> to vector<16xf32>
    %10 = vector.shape_cast %9 : vector<16xf32> to vector<16x1xf32>
    %cst_13 = arith.constant 3.200000e+01 : f32
    %11 = vector.broadcast %cst_13 : f32 to vector<16x1xf32>
    %12 = arith.divf %10, %11 : vector<16x1xf32>
    %13 = vector.broadcast %12 : vector<16x1xf32> to vector<16x32xf32>
    %14 = arith.subf %1, %13 : vector<16x32xf32>
    %15 = arith.mulf %14, %14 : vector<16x32xf32>
    %cst_14 = arith.constant dense<0.000000e+00> : vector<16xf32>
    %16 = vector.multi_reduction <add>, %15, %cst_14 [1] : vector<16x32xf32> to vector<16xf32>
    %17 = vector.shape_cast %16 : vector<16xf32> to vector<16x1xf32>
    %cst_15 = arith.constant 3.200000e+01 : f32
    %18 = vector.broadcast %cst_15 : f32 to vector<16x1xf32>
    %19 = arith.divf %17, %18 : vector<16x1xf32>
    %20 = vector.broadcast %12 : vector<16x1xf32> to vector<16x32xf32>
    %21 = arith.subf %1, %20 : vector<16x32xf32>
    %cst_16 = arith.constant 9.99999974E-6 : f32
    %22 = vector.broadcast %cst_16 : f32 to vector<16x1xf32>
    %23 = arith.addf %19, %22 : vector<16x1xf32>
    %24 = math.rsqrt %23 : vector<16x1xf32>
    %25 = vector.broadcast %24 : vector<16x1xf32> to vector<16x32xf32>
    %26 = arith.mulf %21, %25 : vector<16x32xf32>
    %27 = vector.broadcast %6 : vector<1x32xf32> to vector<16x32xf32>
    %28 = arith.mulf %26, %27 : vector<16x32xf32>
    %29 = vector.broadcast %8 : vector<1x32xf32> to vector<16x32xf32>
    %30 = arith.addf %28, %29 : vector<16x32xf32>
    %31 = arith.truncf %30 : vector<16x32xf32> to vector<16x32xbf16>
    %c0_17 = arith.constant 0 : index
    %c0_18 = arith.constant 0 : index
    %c0_19 = arith.constant 0 : index
    %32 = vector.load %arg4[%c0_17, %c0_18, %c0_19] : memref<2x32x96xbf16, #tpu.memory_space<vmem>>, vector<1x32x96xbf16>
    %33 = vector.shape_cast %32 : vector<1x32x96xbf16> to vector<32x96xbf16>
    %cst_20 = arith.constant dense<0.000000e+00> : vector<16x96xf32>
    %34 = tpu.matmul %31, %33, %cst_20 {dimension_numbers = #tpu.dot_dimension_numbers<[1], [0], [0], [1], [0, 0, 1, 1], [], []>} : vector<16x32xbf16>, vector<32x96xbf16>, vector<16x96xf32> -> vector<16x96xf32>
    %c0_21 = arith.constant 0 : index
    %c0_22 = arith.constant 0 : index
    %c0_23 = arith.constant 0 : index
    %35 = vector.load %arg5[%c0_21, %c0_22, %c0_23] : memref<2x1x96xf32, #tpu.memory_space<vmem>>, vector<1x1x96xf32>
    %36 = vector.shape_cast %35 : vector<1x1x96xf32> to vector<1x96xf32>
    %37 = vector.broadcast %36 : vector<1x96xf32> to vector<16x96xf32>
    %38 = arith.addf %34, %37 : vector<16x96xf32>
    %39 = vector.shape_cast %38 : vector<16x96xf32> to vector<2x8x96xf32>
    %40 = vector.extract_strided_slice %39 {offsets = [0, 0, 0], sizes = [2, 8, 32], strides = [1, 1, 1]} : vector<2x8x96xf32> to vector<2x8x32xf32>
    %41 = vector.broadcast %4 : f32 to vector<2x8x32xf32>
    %42 = arith.mulf %40, %41 : vector<2x8x32xf32>
    %43 = vector.extract_strided_slice %39 {offsets = [0, 0, 32], sizes = [2, 8, 32], strides = [1, 1, 1]} : vector<2x8x96xf32> to vector<2x8x32xf32>
    %44 = vector.extract_strided_slice %39 {offsets = [0, 0, 64], sizes = [2, 8, 32], strides = [1, 1, 1]} : vector<2x8x96xf32> to vector<2x8x32xf32>
    %c0_24 = arith.constant 0 : index
    %c0_25 = arith.constant 0 : index
    %c0_26 = arith.constant 0 : index
    %45 = vector.load %arg6[%c0_24, %c0_25, %c0_26] : memref<2x32x32xbf16, #tpu.memory_space<vmem>>, vector<1x32x32xbf16>
    %46 = vector.shape_cast %45 : vector<1x32x32xbf16> to vector<32x32xbf16>
    %cst_27 = arith.constant 0.000000e+00 : f32
    %47 = vector.broadcast %cst_27 : f32 to vector<16x32xf32>
    %48 = vector.extract_strided_slice %42 {offsets = [0, 0, 0], sizes = [2, 8, 16], strides = [1, 1, 1]} : vector<2x8x32xf32> to vector<2x8x16xf32>
    %49 = vector.extract_strided_slice %43 {offsets = [0, 0, 0], sizes = [2, 8, 16], strides = [1, 1, 1]} : vector<2x8x32xf32> to vector<2x8x16xf32>
    %50 = vector.extract_strided_slice %44 {offsets = [0, 0, 0], sizes = [2, 8, 16], strides = [1, 1, 1]} : vector<2x8x32xf32> to vector<2x8x16xf32>
    "tpu.trace_start"() <{level = 10 : i32, message = "bqd,bkd->bqk"}> : () -> ()
    %cst_28 = arith.constant dense<0.000000e+00> : vector<2x8x8xf32>
    %51 = tpu.matmul %48, %49, %cst_28 {dimension_numbers = #tpu.dot_dimension_numbers<[2], [2], [1], [1], [0, 0, 0, 1, 1, 1], [0], [0]>} : vector<2x8x16xf32>, vector<2x8x16xf32>, vector<2x8x8xf32> -> vector<2x8x8xf32>
    "tpu.trace_stop"() : () -> ()
    %52 = arith.addf %51, %2 : vector<2x8x8xf32>
    %cst_29 = arith.constant dense<0xFF800000> : vector<2x8xf32>
    %53 = vector.multi_reduction <maximumf>, %52, %cst_29 [2] : vector<2x8x8xf32> to vector<2x8xf32>
    %54 = vector.shape_cast %53 : vector<2x8xf32> to vector<2x8x1xf32>
    %55 = vector.broadcast %54 : vector<2x8x1xf32> to vector<2x8x8xf32>
    %56 = arith.subf %52, %55 : vector<2x8x8xf32>
    %57 = math.exp %56 : vector<2x8x8xf32>
    %cst_30 = arith.constant dense<0.000000e+00> : vector<2x8xf32>
    %58 = vector.multi_reduction <add>, %57, %cst_30 [2] : vector<2x8x8xf32> to vector<2x8xf32>
    %59 = vector.shape_cast %58 : vector<2x8xf32> to vector<2x8x1xf32>
    %60 = tpu.reciprocal %59 {approx = true} : vector<2x8x1xf32> -> vector<2x8x1xf32>
    %61 = vector.broadcast %60 : vector<2x8x1xf32> to vector<2x8x8xf32>
    %62 = arith.mulf %57, %61 : vector<2x8x8xf32>
    %63 = arith.truncf %62 : vector<2x8x8xf32> to vector<2x8x8xbf16>
    %64 = arith.truncf %50 : vector<2x8x16xf32> to vector<2x8x16xbf16>
    "tpu.trace_start"() <{level = 10 : i32, message = "bqk,bkd->bqd"}> : () -> ()
    %cst_31 = arith.constant dense<0.000000e+00> : vector<2x8x16xf32>
    %65 = tpu.matmul %63, %64, %cst_31 {dimension_numbers = #tpu.dot_dimension_numbers<[2], [1], [1], [2], [0, 0, 0, 1, 1, 2], [0], [0]>} : vector<2x8x8xbf16>, vector<2x8x16xbf16>, vector<2x8x16xf32> -> vector<2x8x16xf32>
    "tpu.trace_stop"() : () -> ()
    %66 = vector.shape_cast %65 : vector<2x8x16xf32> to vector<16x16xf32>
    %67 = arith.truncf %66 : vector<16x16xf32> to vector<16x16xbf16>
    %68 = vector.extract_strided_slice %46 {offsets = [0, 0], sizes = [16, 32], strides = [1, 1]} : vector<32x32xbf16> to vector<16x32xbf16>
    %cst_32 = arith.constant dense<0.000000e+00> : vector<16x32xf32>
    %69 = tpu.matmul %67, %68, %cst_32 {dimension_numbers = #tpu.dot_dimension_numbers<[1], [0], [0], [1], [0, 0, 1, 1], [], []>} : vector<16x16xbf16>, vector<16x32xbf16>, vector<16x32xf32> -> vector<16x32xf32>
    %70 = arith.addf %47, %69 : vector<16x32xf32>
    %71 = vector.extract_strided_slice %42 {offsets = [0, 0, 16], sizes = [2, 8, 16], strides = [1, 1, 1]} : vector<2x8x32xf32> to vector<2x8x16xf32>
    %72 = vector.extract_strided_slice %43 {offsets = [0, 0, 16], sizes = [2, 8, 16], strides = [1, 1, 1]} : vector<2x8x32xf32> to vector<2x8x16xf32>
    %73 = vector.extract_strided_slice %44 {offsets = [0, 0, 16], sizes = [2, 8, 16], strides = [1, 1, 1]} : vector<2x8x32xf32> to vector<2x8x16xf32>
    "tpu.trace_start"() <{level = 10 : i32, message = "bqd,bkd->bqk"}> : () -> ()
    %cst_33 = arith.constant dense<0.000000e+00> : vector<2x8x8xf32>
    %74 = tpu.matmul %71, %72, %cst_33 {dimension_numbers = #tpu.dot_dimension_numbers<[2], [2], [1], [1], [0, 0, 0, 1, 1, 1], [0], [0]>} : vector<2x8x16xf32>, vector<2x8x16xf32>, vector<2x8x8xf32> -> vector<2x8x8xf32>
    "tpu.trace_stop"() : () -> ()
    %75 = arith.addf %74, %2 : vector<2x8x8xf32>
    %cst_34 = arith.constant dense<0xFF800000> : vector<2x8xf32>
    %76 = vector.multi_reduction <maximumf>, %75, %cst_34 [2] : vector<2x8x8xf32> to vector<2x8xf32>
    %77 = vector.shape_cast %76 : vector<2x8xf32> to vector<2x8x1xf32>
    %78 = vector.broadcast %77 : vector<2x8x1xf32> to vector<2x8x8xf32>
    %79 = arith.subf %75, %78 : vector<2x8x8xf32>
    %80 = math.exp %79 : vector<2x8x8xf32>
    %cst_35 = arith.constant dense<0.000000e+00> : vector<2x8xf32>
    %81 = vector.multi_reduction <add>, %80, %cst_35 [2] : vector<2x8x8xf32> to vector<2x8xf32>
    %82 = vector.shape_cast %81 : vector<2x8xf32> to vector<2x8x1xf32>
    %83 = tpu.reciprocal %82 {approx = true} : vector<2x8x1xf32> -> vector<2x8x1xf32>
    %84 = vector.broadcast %83 : vector<2x8x1xf32> to vector<2x8x8xf32>
    %85 = arith.mulf %80, %84 : vector<2x8x8xf32>
    %86 = arith.truncf %85 : vector<2x8x8xf32> to vector<2x8x8xbf16>
    %87 = arith.truncf %73 : vector<2x8x16xf32> to vector<2x8x16xbf16>
    "tpu.trace_start"() <{level = 10 : i32, message = "bqk,bkd->bqd"}> : () -> ()
    %cst_36 = arith.constant dense<0.000000e+00> : vector<2x8x16xf32>
    %88 = tpu.matmul %86, %87, %cst_36 {dimension_numbers = #tpu.dot_dimension_numbers<[2], [1], [1], [2], [0, 0, 0, 1, 1, 2], [0], [0]>} : vector<2x8x8xbf16>, vector<2x8x16xbf16>, vector<2x8x16xf32> -> vector<2x8x16xf32>
    "tpu.trace_stop"() : () -> ()
    %89 = vector.shape_cast %88 : vector<2x8x16xf32> to vector<16x16xf32>
    %90 = arith.truncf %89 : vector<16x16xf32> to vector<16x16xbf16>
    %91 = vector.extract_strided_slice %46 {offsets = [16, 0], sizes = [16, 32], strides = [1, 1]} : vector<32x32xbf16> to vector<16x32xbf16>
    %cst_37 = arith.constant dense<0.000000e+00> : vector<16x32xf32>
    %92 = tpu.matmul %90, %91, %cst_37 {dimension_numbers = #tpu.dot_dimension_numbers<[1], [0], [0], [1], [0, 0, 1, 1], [], []>} : vector<16x16xbf16>, vector<16x32xbf16>, vector<16x32xf32> -> vector<16x32xf32>
    %93 = arith.addf %70, %92 : vector<16x32xf32>
    %94 = arith.addf %1, %93 : vector<16x32xf32>
    %c0_38 = arith.constant 0 : index
    %c0_39 = arith.constant 0 : index
    %c0_40 = arith.constant 0 : index
    %95 = vector.load %arg7[%c0_38, %c0_39, %c0_40] : memref<2x1x32xf32, #tpu.memory_space<vmem>>, vector<1x1x32xf32>
    %96 = vector.shape_cast %95 : vector<1x1x32xf32> to vector<1x32xf32>
    %97 = vector.broadcast %96 : vector<1x32xf32> to vector<16x32xf32>
    %98 = arith.addf %94, %97 : vector<16x32xf32>
    %c0_41 = arith.constant 0 : index
    %c0_42 = arith.constant 0 : index
    %c0_43 = arith.constant 0 : index
    %99 = vector.load %arg8[%c0_41, %c0_42, %c0_43] : memref<2x1x32xf32, #tpu.memory_space<vmem>>, vector<1x1x32xf32>
    %100 = vector.shape_cast %99 : vector<1x1x32xf32> to vector<1x32xf32>
    %c0_44 = arith.constant 0 : index
    %c0_45 = arith.constant 0 : index
    %c0_46 = arith.constant 0 : index
    %101 = vector.load %arg9[%c0_44, %c0_45, %c0_46] : memref<2x1x32xf32, #tpu.memory_space<vmem>>, vector<1x1x32xf32>
    %102 = vector.shape_cast %101 : vector<1x1x32xf32> to vector<1x32xf32>
    %cst_47 = arith.constant dense<0.000000e+00> : vector<16xf32>
    %103 = vector.multi_reduction <add>, %98, %cst_47 [1] : vector<16x32xf32> to vector<16xf32>
    %104 = vector.shape_cast %103 : vector<16xf32> to vector<16x1xf32>
    %cst_48 = arith.constant 3.200000e+01 : f32
    %105 = vector.broadcast %cst_48 : f32 to vector<16x1xf32>
    %106 = arith.divf %104, %105 : vector<16x1xf32>
    %107 = vector.broadcast %106 : vector<16x1xf32> to vector<16x32xf32>
    %108 = arith.subf %98, %107 : vector<16x32xf32>
    %109 = arith.mulf %108, %108 : vector<16x32xf32>
    %cst_49 = arith.constant dense<0.000000e+00> : vector<16xf32>
    %110 = vector.multi_reduction <add>, %109, %cst_49 [1] : vector<16x32xf32> to vector<16xf32>
    %111 = vector.shape_cast %110 : vector<16xf32> to vector<16x1xf32>
    %cst_50 = arith.constant 3.200000e+01 : f32
    %112 = vector.broadcast %cst_50 : f32 to vector<16x1xf32>
    %113 = arith.divf %111, %112 : vector<16x1xf32>
    %114 = vector.broadcast %106 : vector<16x1xf32> to vector<16x32xf32>
    %115 = arith.subf %98, %114 : vector<16x32xf32>
    %cst_51 = arith.constant 9.99999974E-6 : f32
    %116 = vector.broadcast %cst_51 : f32 to vector<16x1xf32>
    %117 = arith.addf %113, %116 : vector<16x1xf32>
    %118 = math.rsqrt %117 : vector<16x1xf32>
    %119 = vector.broadcast %118 : vector<16x1xf32> to vector<16x32xf32>
    %120 = arith.mulf %115, %119 : vector<16x32xf32>
    %121 = vector.broadcast %100 : vector<1x32xf32> to vector<16x32xf32>
    %122 = arith.mulf %120, %121 : vector<16x32xf32>
    %123 = vector.broadcast %102 : vector<1x32xf32> to vector<16x32xf32>
    %124 = arith.addf %122, %123 : vector<16x32xf32>
    %125 = arith.truncf %124 : vector<16x32xf32> to vector<16x32xbf16>
    %c0_52 = arith.constant 0 : index
    %c0_53 = arith.constant 0 : index
    %c0_54 = arith.constant 0 : index
    %126 = vector.load %arg10[%c0_52, %c0_53, %c0_54] : memref<2x32x128xbf16, #tpu.memory_space<vmem>>, vector<1x32x128xbf16>
    %127 = vector.shape_cast %126 : vector<1x32x128xbf16> to vector<32x128xbf16>
    %cst_55 = arith.constant dense<0.000000e+00> : vector<16x128xf32>
    %128 = tpu.matmul %125, %127, %cst_55 {dimension_numbers = #tpu.dot_dimension_numbers<[1], [0], [0], [1], [0, 0, 1, 1], [], []>} : vector<16x32xbf16>, vector<32x128xbf16>, vector<16x128xf32> -> vector<16x128xf32>
    %c0_56 = arith.constant 0 : index
    %c0_57 = arith.constant 0 : index
    %c0_58 = arith.constant 0 : index
    %129 = vector.load %arg11[%c0_56, %c0_57, %c0_58] : memref<2x1x128xf32, #tpu.memory_space<vmem>>, vector<1x1x128xf32>
    %130 = vector.shape_cast %129 : vector<1x1x128xf32> to vector<1x128xf32>
    %131 = vector.broadcast %130 : vector<1x128xf32> to vector<16x128xf32>
    %132 = arith.addf %128, %131 : vector<16x128xf32>
    %cst_59 = arith.constant 5.000000e-01 : f32
    %133 = vector.broadcast %cst_59 : f32 to vector<16x128xf32>
    %134 = arith.mulf %133, %132 : vector<16x128xf32>
    %cst_60 = arith.constant 4.471500e-02 : f32
    %135 = vector.broadcast %cst_60 : f32 to vector<16x128xf32>
    %136 = arith.mulf %135, %132 : vector<16x128xf32>
    %137 = arith.mulf %136, %132 : vector<16x128xf32>
    %138 = arith.mulf %137, %132 : vector<16x128xf32>
    %139 = arith.addf %132, %138 : vector<16x128xf32>
    %cst_61 = arith.constant 0.797884583 : f32
    %140 = vector.broadcast %cst_61 : f32 to vector<16x128xf32>
    %141 = arith.mulf %140, %139 : vector<16x128xf32>
    %142 = math.tanh %141 : vector<16x128xf32>
    %cst_62 = arith.constant 1.000000e+00 : f32
    %143 = vector.broadcast %cst_62 : f32 to vector<16x128xf32>
    %144 = arith.addf %143, %142 : vector<16x128xf32>
    %145 = arith.mulf %134, %144 : vector<16x128xf32>
    %146 = arith.truncf %145 : vector<16x128xf32> to vector<16x128xbf16>
    %c0_63 = arith.constant 0 : index
    %c0_64 = arith.constant 0 : index
    %c0_65 = arith.constant 0 : index
    %147 = vector.load %arg12[%c0_63, %c0_64, %c0_65] : memref<2x128x32xbf16, #tpu.memory_space<vmem>>, vector<1x128x32xbf16>
    %148 = vector.shape_cast %147 : vector<1x128x32xbf16> to vector<128x32xbf16>
    %cst_66 = arith.constant dense<0.000000e+00> : vector<16x32xf32>
    %149 = tpu.matmul %146, %148, %cst_66 {dimension_numbers = #tpu.dot_dimension_numbers<[1], [0], [0], [1], [0, 0, 1, 1], [], []>} : vector<16x128xbf16>, vector<128x32xbf16>, vector<16x32xf32> -> vector<16x32xf32>
    %150 = arith.addf %98, %149 : vector<16x32xf32>
    %c0_67 = arith.constant 0 : index
    %c0_68 = arith.constant 0 : index
    %c0_69 = arith.constant 0 : index
    %151 = vector.load %arg13[%c0_67, %c0_68, %c0_69] : memref<2x1x32xf32, #tpu.memory_space<vmem>>, vector<1x1x32xf32>
    %152 = vector.shape_cast %151 : vector<1x1x32xf32> to vector<1x32xf32>
    %153 = vector.broadcast %152 : vector<1x32xf32> to vector<16x32xf32>
    %154 = arith.addf %150, %153 : vector<16x32xf32>
    %c1 = arith.constant 1 : index
    %c0_70 = arith.constant 0 : index
    %c0_71 = arith.constant 0 : index
    %155 = vector.load %arg2[%c1, %c0_70, %c0_71] : memref<2x1x32xf32, #tpu.memory_space<vmem>>, vector<1x1x32xf32>
    %156 = vector.shape_cast %155 : vector<1x1x32xf32> to vector<1x32xf32>
    %c1_72 = arith.constant 1 : index
    %c0_73 = arith.constant 0 : index
    %c0_74 = arith.constant 0 : index
    %157 = vector.load %arg3[%c1_72, %c0_73, %c0_74] : memref<2x1x32xf32, #tpu.memory_space<vmem>>, vector<1x1x32xf32>
    %158 = vector.shape_cast %157 : vector<1x1x32xf32> to vector<1x32xf32>
    %cst_75 = arith.constant dense<0.000000e+00> : vector<16xf32>
    %159 = vector.multi_reduction <add>, %154, %cst_75 [1] : vector<16x32xf32> to vector<16xf32>
    %160 = vector.shape_cast %159 : vector<16xf32> to vector<16x1xf32>
    %cst_76 = arith.constant 3.200000e+01 : f32
    %161 = vector.broadcast %cst_76 : f32 to vector<16x1xf32>
    %162 = arith.divf %160, %161 : vector<16x1xf32>
    %163 = vector.broadcast %162 : vector<16x1xf32> to vector<16x32xf32>
    %164 = arith.subf %154, %163 : vector<16x32xf32>
    %165 = arith.mulf %164, %164 : vector<16x32xf32>
    %cst_77 = arith.constant dense<0.000000e+00> : vector<16xf32>
    %166 = vector.multi_reduction <add>, %165, %cst_77 [1] : vector<16x32xf32> to vector<16xf32>
    %167 = vector.shape_cast %166 : vector<16xf32> to vector<16x1xf32>
    %cst_78 = arith.constant 3.200000e+01 : f32
    %168 = vector.broadcast %cst_78 : f32 to vector<16x1xf32>
    %169 = arith.divf %167, %168 : vector<16x1xf32>
    %170 = vector.broadcast %162 : vector<16x1xf32> to vector<16x32xf32>
    %171 = arith.subf %154, %170 : vector<16x32xf32>
    %cst_79 = arith.constant 9.99999974E-6 : f32
    %172 = vector.broadcast %cst_79 : f32 to vector<16x1xf32>
    %173 = arith.addf %169, %172 : vector<16x1xf32>
    %174 = math.rsqrt %173 : vector<16x1xf32>
    %175 = vector.broadcast %174 : vector<16x1xf32> to vector<16x32xf32>
    %176 = arith.mulf %171, %175 : vector<16x32xf32>
    %177 = vector.broadcast %156 : vector<1x32xf32> to vector<16x32xf32>
    %178 = arith.mulf %176, %177 : vector<16x32xf32>
    %179 = vector.broadcast %158 : vector<1x32xf32> to vector<16x32xf32>
    %180 = arith.addf %178, %179 : vector<16x32xf32>
    %181 = arith.truncf %180 : vector<16x32xf32> to vector<16x32xbf16>
    %c1_80 = arith.constant 1 : index
    %c0_81 = arith.constant 0 : index
    %c0_82 = arith.constant 0 : index
    %182 = vector.load %arg4[%c1_80, %c0_81, %c0_82] : memref<2x32x96xbf16, #tpu.memory_space<vmem>>, vector<1x32x96xbf16>
    %183 = vector.shape_cast %182 : vector<1x32x96xbf16> to vector<32x96xbf16>
    %cst_83 = arith.constant dense<0.000000e+00> : vector<16x96xf32>
    %184 = tpu.matmul %181, %183, %cst_83 {dimension_numbers = #tpu.dot_dimension_numbers<[1], [0], [0], [1], [0, 0, 1, 1], [], []>} : vector<16x32xbf16>, vector<32x96xbf16>, vector<16x96xf32> -> vector<16x96xf32>
    %c1_84 = arith.constant 1 : index
    %c0_85 = arith.constant 0 : index
    %c0_86 = arith.constant 0 : index
    %185 = vector.load %arg5[%c1_84, %c0_85, %c0_86] : memref<2x1x96xf32, #tpu.memory_space<vmem>>, vector<1x1x96xf32>
    %186 = vector.shape_cast %185 : vector<1x1x96xf32> to vector<1x96xf32>
    %187 = vector.broadcast %186 : vector<1x96xf32> to vector<16x96xf32>
    %188 = arith.addf %184, %187 : vector<16x96xf32>
    %189 = vector.shape_cast %188 : vector<16x96xf32> to vector<2x8x96xf32>
    %190 = vector.extract_strided_slice %189 {offsets = [0, 0, 0], sizes = [2, 8, 32], strides = [1, 1, 1]} : vector<2x8x96xf32> to vector<2x8x32xf32>
    %191 = vector.broadcast %4 : f32 to vector<2x8x32xf32>
    %192 = arith.mulf %190, %191 : vector<2x8x32xf32>
    %193 = vector.extract_strided_slice %189 {offsets = [0, 0, 32], sizes = [2, 8, 32], strides = [1, 1, 1]} : vector<2x8x96xf32> to vector<2x8x32xf32>
    %194 = vector.extract_strided_slice %189 {offsets = [0, 0, 64], sizes = [2, 8, 32], strides = [1, 1, 1]} : vector<2x8x96xf32> to vector<2x8x32xf32>
    %c1_87 = arith.constant 1 : index
    %c0_88 = arith.constant 0 : index
    %c0_89 = arith.constant 0 : index
    %195 = vector.load %arg6[%c1_87, %c0_88, %c0_89] : memref<2x32x32xbf16, #tpu.memory_space<vmem>>, vector<1x32x32xbf16>
    %196 = vector.shape_cast %195 : vector<1x32x32xbf16> to vector<32x32xbf16>
    %cst_90 = arith.constant 0.000000e+00 : f32
    %197 = vector.broadcast %cst_90 : f32 to vector<16x32xf32>
    %198 = vector.extract_strided_slice %192 {offsets = [0, 0, 0], sizes = [2, 8, 16], strides = [1, 1, 1]} : vector<2x8x32xf32> to vector<2x8x16xf32>
    %199 = vector.extract_strided_slice %193 {offsets = [0, 0, 0], sizes = [2, 8, 16], strides = [1, 1, 1]} : vector<2x8x32xf32> to vector<2x8x16xf32>
    %200 = vector.extract_strided_slice %194 {offsets = [0, 0, 0], sizes = [2, 8, 16], strides = [1, 1, 1]} : vector<2x8x32xf32> to vector<2x8x16xf32>
    "tpu.trace_start"() <{level = 10 : i32, message = "bqd,bkd->bqk"}> : () -> ()
    %cst_91 = arith.constant dense<0.000000e+00> : vector<2x8x8xf32>
    %201 = tpu.matmul %198, %199, %cst_91 {dimension_numbers = #tpu.dot_dimension_numbers<[2], [2], [1], [1], [0, 0, 0, 1, 1, 1], [0], [0]>} : vector<2x8x16xf32>, vector<2x8x16xf32>, vector<2x8x8xf32> -> vector<2x8x8xf32>
    "tpu.trace_stop"() : () -> ()
    %202 = arith.addf %201, %2 : vector<2x8x8xf32>
    %cst_92 = arith.constant dense<0xFF800000> : vector<2x8xf32>
    %203 = vector.multi_reduction <maximumf>, %202, %cst_92 [2] : vector<2x8x8xf32> to vector<2x8xf32>
    %204 = vector.shape_cast %203 : vector<2x8xf32> to vector<2x8x1xf32>
    %205 = vector.broadcast %204 : vector<2x8x1xf32> to vector<2x8x8xf32>
    %206 = arith.subf %202, %205 : vector<2x8x8xf32>
    %207 = math.exp %206 : vector<2x8x8xf32>
    %cst_93 = arith.constant dense<0.000000e+00> : vector<2x8xf32>
    %208 = vector.multi_reduction <add>, %207, %cst_93 [2] : vector<2x8x8xf32> to vector<2x8xf32>
    %209 = vector.shape_cast %208 : vector<2x8xf32> to vector<2x8x1xf32>
    %210 = tpu.reciprocal %209 {approx = true} : vector<2x8x1xf32> -> vector<2x8x1xf32>
    %211 = vector.broadcast %210 : vector<2x8x1xf32> to vector<2x8x8xf32>
    %212 = arith.mulf %207, %211 : vector<2x8x8xf32>
    %213 = arith.truncf %212 : vector<2x8x8xf32> to vector<2x8x8xbf16>
    %214 = arith.truncf %200 : vector<2x8x16xf32> to vector<2x8x16xbf16>
    "tpu.trace_start"() <{level = 10 : i32, message = "bqk,bkd->bqd"}> : () -> ()
    %cst_94 = arith.constant dense<0.000000e+00> : vector<2x8x16xf32>
    %215 = tpu.matmul %213, %214, %cst_94 {dimension_numbers = #tpu.dot_dimension_numbers<[2], [1], [1], [2], [0, 0, 0, 1, 1, 2], [0], [0]>} : vector<2x8x8xbf16>, vector<2x8x16xbf16>, vector<2x8x16xf32> -> vector<2x8x16xf32>
    "tpu.trace_stop"() : () -> ()
    %216 = vector.shape_cast %215 : vector<2x8x16xf32> to vector<16x16xf32>
    %217 = arith.truncf %216 : vector<16x16xf32> to vector<16x16xbf16>
    %218 = vector.extract_strided_slice %196 {offsets = [0, 0], sizes = [16, 32], strides = [1, 1]} : vector<32x32xbf16> to vector<16x32xbf16>
    %cst_95 = arith.constant dense<0.000000e+00> : vector<16x32xf32>
    %219 = tpu.matmul %217, %218, %cst_95 {dimension_numbers = #tpu.dot_dimension_numbers<[1], [0], [0], [1], [0, 0, 1, 1], [], []>} : vector<16x16xbf16>, vector<16x32xbf16>, vector<16x32xf32> -> vector<16x32xf32>
    %220 = arith.addf %197, %219 : vector<16x32xf32>
    %221 = vector.extract_strided_slice %192 {offsets = [0, 0, 16], sizes = [2, 8, 16], strides = [1, 1, 1]} : vector<2x8x32xf32> to vector<2x8x16xf32>
    %222 = vector.extract_strided_slice %193 {offsets = [0, 0, 16], sizes = [2, 8, 16], strides = [1, 1, 1]} : vector<2x8x32xf32> to vector<2x8x16xf32>
    %223 = vector.extract_strided_slice %194 {offsets = [0, 0, 16], sizes = [2, 8, 16], strides = [1, 1, 1]} : vector<2x8x32xf32> to vector<2x8x16xf32>
    "tpu.trace_start"() <{level = 10 : i32, message = "bqd,bkd->bqk"}> : () -> ()
    %cst_96 = arith.constant dense<0.000000e+00> : vector<2x8x8xf32>
    %224 = tpu.matmul %221, %222, %cst_96 {dimension_numbers = #tpu.dot_dimension_numbers<[2], [2], [1], [1], [0, 0, 0, 1, 1, 1], [0], [0]>} : vector<2x8x16xf32>, vector<2x8x16xf32>, vector<2x8x8xf32> -> vector<2x8x8xf32>
    "tpu.trace_stop"() : () -> ()
    %225 = arith.addf %224, %2 : vector<2x8x8xf32>
    %cst_97 = arith.constant dense<0xFF800000> : vector<2x8xf32>
    %226 = vector.multi_reduction <maximumf>, %225, %cst_97 [2] : vector<2x8x8xf32> to vector<2x8xf32>
    %227 = vector.shape_cast %226 : vector<2x8xf32> to vector<2x8x1xf32>
    %228 = vector.broadcast %227 : vector<2x8x1xf32> to vector<2x8x8xf32>
    %229 = arith.subf %225, %228 : vector<2x8x8xf32>
    %230 = math.exp %229 : vector<2x8x8xf32>
    %cst_98 = arith.constant dense<0.000000e+00> : vector<2x8xf32>
    %231 = vector.multi_reduction <add>, %230, %cst_98 [2] : vector<2x8x8xf32> to vector<2x8xf32>
    %232 = vector.shape_cast %231 : vector<2x8xf32> to vector<2x8x1xf32>
    %233 = tpu.reciprocal %232 {approx = true} : vector<2x8x1xf32> -> vector<2x8x1xf32>
    %234 = vector.broadcast %233 : vector<2x8x1xf32> to vector<2x8x8xf32>
    %235 = arith.mulf %230, %234 : vector<2x8x8xf32>
    %236 = arith.truncf %235 : vector<2x8x8xf32> to vector<2x8x8xbf16>
    %237 = arith.truncf %223 : vector<2x8x16xf32> to vector<2x8x16xbf16>
    "tpu.trace_start"() <{level = 10 : i32, message = "bqk,bkd->bqd"}> : () -> ()
    %cst_99 = arith.constant dense<0.000000e+00> : vector<2x8x16xf32>
    %238 = tpu.matmul %236, %237, %cst_99 {dimension_numbers = #tpu.dot_dimension_numbers<[2], [1], [1], [2], [0, 0, 0, 1, 1, 2], [0], [0]>} : vector<2x8x8xbf16>, vector<2x8x16xbf16>, vector<2x8x16xf32> -> vector<2x8x16xf32>
    "tpu.trace_stop"() : () -> ()
    %239 = vector.shape_cast %238 : vector<2x8x16xf32> to vector<16x16xf32>
    %240 = arith.truncf %239 : vector<16x16xf32> to vector<16x16xbf16>
    %241 = vector.extract_strided_slice %196 {offsets = [16, 0], sizes = [16, 32], strides = [1, 1]} : vector<32x32xbf16> to vector<16x32xbf16>
    %cst_100 = arith.constant dense<0.000000e+00> : vector<16x32xf32>
    %242 = tpu.matmul %240, %241, %cst_100 {dimension_numbers = #tpu.dot_dimension_numbers<[1], [0], [0], [1], [0, 0, 1, 1], [], []>} : vector<16x16xbf16>, vector<16x32xbf16>, vector<16x32xf32> -> vector<16x32xf32>
    %243 = arith.addf %220, %242 : vector<16x32xf32>
    %244 = arith.addf %154, %243 : vector<16x32xf32>
    %c1_101 = arith.constant 1 : index
    %c0_102 = arith.constant 0 : index
    %c0_103 = arith.constant 0 : index
    %245 = vector.load %arg7[%c1_101, %c0_102, %c0_103] : memref<2x1x32xf32, #tpu.memory_space<vmem>>, vector<1x1x32xf32>
    %246 = vector.shape_cast %245 : vector<1x1x32xf32> to vector<1x32xf32>
    %247 = vector.broadcast %246 : vector<1x32xf32> to vector<16x32xf32>
    %248 = arith.addf %244, %247 : vector<16x32xf32>
    %c1_104 = arith.constant 1 : index
    %c0_105 = arith.constant 0 : index
    %c0_106 = arith.constant 0 : index
    %249 = vector.load %arg8[%c1_104, %c0_105, %c0_106] : memref<2x1x32xf32, #tpu.memory_space<vmem>>, vector<1x1x32xf32>
    %250 = vector.shape_cast %249 : vector<1x1x32xf32> to vector<1x32xf32>
    %c1_107 = arith.constant 1 : index
    %c0_108 = arith.constant 0 : index
    %c0_109 = arith.constant 0 : index
    %251 = vector.load %arg9[%c1_107, %c0_108, %c0_109] : memref<2x1x32xf32, #tpu.memory_space<vmem>>, vector<1x1x32xf32>
    %252 = vector.shape_cast %251 : vector<1x1x32xf32> to vector<1x32xf32>
    %cst_110 = arith.constant dense<0.000000e+00> : vector<16xf32>
    %253 = vector.multi_reduction <add>, %248, %cst_110 [1] : vector<16x32xf32> to vector<16xf32>
    %254 = vector.shape_cast %253 : vector<16xf32> to vector<16x1xf32>
    %cst_111 = arith.constant 3.200000e+01 : f32
    %255 = vector.broadcast %cst_111 : f32 to vector<16x1xf32>
    %256 = arith.divf %254, %255 : vector<16x1xf32>
    %257 = vector.broadcast %256 : vector<16x1xf32> to vector<16x32xf32>
    %258 = arith.subf %248, %257 : vector<16x32xf32>
    %259 = arith.mulf %258, %258 : vector<16x32xf32>
    %cst_112 = arith.constant dense<0.000000e+00> : vector<16xf32>
    %260 = vector.multi_reduction <add>, %259, %cst_112 [1] : vector<16x32xf32> to vector<16xf32>
    %261 = vector.shape_cast %260 : vector<16xf32> to vector<16x1xf32>
    %cst_113 = arith.constant 3.200000e+01 : f32
    %262 = vector.broadcast %cst_113 : f32 to vector<16x1xf32>
    %263 = arith.divf %261, %262 : vector<16x1xf32>
    %264 = vector.broadcast %256 : vector<16x1xf32> to vector<16x32xf32>
    %265 = arith.subf %248, %264 : vector<16x32xf32>
    %cst_114 = arith.constant 9.99999974E-6 : f32
    %266 = vector.broadcast %cst_114 : f32 to vector<16x1xf32>
    %267 = arith.addf %263, %266 : vector<16x1xf32>
    %268 = math.rsqrt %267 : vector<16x1xf32>
    %269 = vector.broadcast %268 : vector<16x1xf32> to vector<16x32xf32>
    %270 = arith.mulf %265, %269 : vector<16x32xf32>
    %271 = vector.broadcast %250 : vector<1x32xf32> to vector<16x32xf32>
    %272 = arith.mulf %270, %271 : vector<16x32xf32>
    %273 = vector.broadcast %252 : vector<1x32xf32> to vector<16x32xf32>
    %274 = arith.addf %272, %273 : vector<16x32xf32>
    %275 = arith.truncf %274 : vector<16x32xf32> to vector<16x32xbf16>
    %c1_115 = arith.constant 1 : index
    %c0_116 = arith.constant 0 : index
    %c0_117 = arith.constant 0 : index
    %276 = vector.load %arg10[%c1_115, %c0_116, %c0_117] : memref<2x32x128xbf16, #tpu.memory_space<vmem>>, vector<1x32x128xbf16>
    %277 = vector.shape_cast %276 : vector<1x32x128xbf16> to vector<32x128xbf16>
    %cst_118 = arith.constant dense<0.000000e+00> : vector<16x128xf32>
    %278 = tpu.matmul %275, %277, %cst_118 {dimension_numbers = #tpu.dot_dimension_numbers<[1], [0], [0], [1], [0, 0, 1, 1], [], []>} : vector<16x32xbf16>, vector<32x128xbf16>, vector<16x128xf32> -> vector<16x128xf32>
    %c1_119 = arith.constant 1 : index
    %c0_120 = arith.constant 0 : index
    %c0_121 = arith.constant 0 : index
    %279 = vector.load %arg11[%c1_119, %c0_120, %c0_121] : memref<2x1x128xf32, #tpu.memory_space<vmem>>, vector<1x1x128xf32>
    %280 = vector.shape_cast %279 : vector<1x1x128xf32> to vector<1x128xf32>
    %281 = vector.broadcast %280 : vector<1x128xf32> to vector<16x128xf32>
    %282 = arith.addf %278, %281 : vector<16x128xf32>
    %cst_122 = arith.constant 5.000000e-01 : f32
    %283 = vector.broadcast %cst_122 : f32 to vector<16x128xf32>
    %284 = arith.mulf %283, %282 : vector<16x128xf32>
    %cst_123 = arith.constant 4.471500e-02 : f32
    %285 = vector.broadcast %cst_123 : f32 to vector<16x128xf32>
    %286 = arith.mulf %285, %282 : vector<16x128xf32>
    %287 = arith.mulf %286, %282 : vector<16x128xf32>
    %288 = arith.mulf %287, %282 : vector<16x128xf32>
    %289 = arith.addf %282, %288 : vector<16x128xf32>
    %cst_124 = arith.constant 0.797884583 : f32
    %290 = vector.broadcast %cst_124 : f32 to vector<16x128xf32>
    %291 = arith.mulf %290, %289 : vector<16x128xf32>
    %292 = math.tanh %291 : vector<16x128xf32>
    %cst_125 = arith.constant 1.000000e+00 : f32
    %293 = vector.broadcast %cst_125 : f32 to vector<16x128xf32>
    %294 = arith.addf %293, %292 : vector<16x128xf32>
    %295 = arith.mulf %284, %294 : vector<16x128xf32>
    %296 = arith.truncf %295 : vector<16x128xf32> to vector<16x128xbf16>
    %c1_126 = arith.constant 1 : index
    %c0_127 = arith.constant 0 : index
    %c0_128 = arith.constant 0 : index
    %297 = vector.load %arg12[%c1_126, %c0_127, %c0_128] : memref<2x128x32xbf16, #tpu.memory_space<vmem>>, vector<1x128x32xbf16>
    %298 = vector.shape_cast %297 : vector<1x128x32xbf16> to vector<128x32xbf16>
    %cst_129 = arith.constant dense<0.000000e+00> : vector<16x32xf32>
    %299 = tpu.matmul %296, %298, %cst_129 {dimension_numbers = #tpu.dot_dimension_numbers<[1], [0], [0], [1], [0, 0, 1, 1], [], []>} : vector<16x128xbf16>, vector<128x32xbf16>, vector<16x32xf32> -> vector<16x32xf32>
    %300 = arith.addf %248, %299 : vector<16x32xf32>
    %c1_130 = arith.constant 1 : index
    %c0_131 = arith.constant 0 : index
    %c0_132 = arith.constant 0 : index
    %301 = vector.load %arg13[%c1_130, %c0_131, %c0_132] : memref<2x1x32xf32, #tpu.memory_space<vmem>>, vector<1x1x32xf32>
    %302 = vector.shape_cast %301 : vector<1x1x32xf32> to vector<1x32xf32>
    %303 = vector.broadcast %302 : vector<1x32xf32> to vector<16x32xf32>
    %304 = arith.addf %300, %303 : vector<16x32xf32>
    %c0_133 = arith.constant 0 : index
    %c0_134 = arith.constant 0 : index
    %305 = vector.load %arg14[%c0_133, %c0_134] : memref<1x32xf32, #tpu.memory_space<vmem>>, vector<1x32xf32>
    %c0_135 = arith.constant 0 : index
    %c0_136 = arith.constant 0 : index
    %306 = vector.load %arg15[%c0_135, %c0_136] : memref<1x32xf32, #tpu.memory_space<vmem>>, vector<1x32xf32>
    %cst_137 = arith.constant dense<0.000000e+00> : vector<16xf32>
    %307 = vector.multi_reduction <add>, %304, %cst_137 [1] : vector<16x32xf32> to vector<16xf32>
    %308 = vector.shape_cast %307 : vector<16xf32> to vector<16x1xf32>
    %cst_138 = arith.constant 3.200000e+01 : f32
    %309 = vector.broadcast %cst_138 : f32 to vector<16x1xf32>
    %310 = arith.divf %308, %309 : vector<16x1xf32>
    %311 = vector.broadcast %310 : vector<16x1xf32> to vector<16x32xf32>
    %312 = arith.subf %304, %311 : vector<16x32xf32>
    %313 = arith.mulf %312, %312 : vector<16x32xf32>
    %cst_139 = arith.constant dense<0.000000e+00> : vector<16xf32>
    %314 = vector.multi_reduction <add>, %313, %cst_139 [1] : vector<16x32xf32> to vector<16xf32>
    %315 = vector.shape_cast %314 : vector<16xf32> to vector<16x1xf32>
    %cst_140 = arith.constant 3.200000e+01 : f32
    %316 = vector.broadcast %cst_140 : f32 to vector<16x1xf32>
    %317 = arith.divf %315, %316 : vector<16x1xf32>
    %318 = vector.broadcast %310 : vector<16x1xf32> to vector<16x32xf32>
    %319 = arith.subf %304, %318 : vector<16x32xf32>
    %cst_141 = arith.constant 9.99999974E-6 : f32
    %320 = vector.broadcast %cst_141 : f32 to vector<16x1xf32>
    %321 = arith.addf %317, %320 : vector<16x1xf32>
    %322 = math.rsqrt %321 : vector<16x1xf32>
    %323 = vector.broadcast %322 : vector<16x1xf32> to vector<16x32xf32>
    %324 = arith.mulf %319, %323 : vector<16x32xf32>
    %325 = vector.broadcast %305 : vector<1x32xf32> to vector<16x32xf32>
    %326 = arith.mulf %324, %325 : vector<16x32xf32>
    %327 = vector.broadcast %306 : vector<1x32xf32> to vector<16x32xf32>
    %328 = arith.addf %326, %327 : vector<16x32xf32>
    %329 = arith.truncf %328 : vector<16x32xf32> to vector<16x32xbf16>
    %c0_142 = arith.constant 0 : index
    %c0_143 = arith.constant 0 : index
    %330 = vector.load %arg16[%c0_142, %c0_143] : memref<32x128xbf16, #tpu.memory_space<vmem>>, vector<32x128xbf16>
    %cst_144 = arith.constant dense<0.000000e+00> : vector<16x128xf32>
    %331 = tpu.matmul %329, %330, %cst_144 {dimension_numbers = #tpu.dot_dimension_numbers<[1], [0], [0], [1], [0, 0, 1, 1], [], []>} : vector<16x32xbf16>, vector<32x128xbf16>, vector<16x128xf32> -> vector<16x128xf32>
    %332 = vector.shape_cast %331 : vector<16x128xf32> to vector<2x8x128xf32>
    %c0_145 = arith.constant 0 : index
    %c0_146 = arith.constant 0 : index
    %c0_147 = arith.constant 0 : index
    %333 = vector.load %arg17[%c0_145, %c0_146, %c0_147] : memref<2x8x128xf32, #tpu.memory_space<vmem>>, vector<2x8x128xf32>
    tpu.vector_store %arg17[%c0_145, %c0_146, %c0_147], %332 {strides = array<i32>} : memref<2x8x128xf32, #tpu.memory_space<vmem>>, vector<2x8x128xf32>,
    return
  }
}

</mosaic_0001>

<bundles_post_ra>
// kernel: sonnet_gpt_forward.1
= control target key start
LH: loop header
LB: loop body
LE: loop exit
PB: predicated region body
PF: predicated region fallthrough
CT: control target
= control target key end

     0   :  { %s2172_s0 = inlined_call_operand.vmem [shape: f32[2,8,32], index: 0, kind: input, shape index: {}]   ;;  %s2173_s1 = inlined_call_operand.vmem [shape: f32[2,8,8], index: 1, kind: input, shape index: {}]   ;;  %s2174_s2 = inlined_call_operand.vmem [shape: f32[2,1,32], index: 2, kind: input, shape index: {}, may-alias: {2,8}]   ;;  %s2175_s3 = inlined_call_operand.vmem [shape: f32[2,1,32], index: 3, kind: input, shape index: {}, may-alias: {3,7,9,13}]   ;;  %s2176_s4 = inlined_call_operand.vmem [shape: bf16[2,32,96], index: 4, kind: input, shape index: {}]   ;;  %s2177_s5 = inlined_call_operand.vmem [shape: f32[2,1,96], index: 5, kind: input, shape index: {}]   ;;  %s2178_s6 = inlined_call_operand.vmem [shape: bf16[2,32,32], index: 6, kind: input, shape index: {}]   ;;  %s2179_s7 = inlined_call_operand.vmem [shape: f32[2,1,32], index: 7, kind: input, shape index: {}, may-alias: {3,7,9,13}]   ;;  %s2180_s8 = inlined_call_operand.vmem [shape: f32[2,1,32], index: 8, kind: input, shape index: {}, may-alias: {2,8}]   ;;  %s2181_s9 = inlined_call_operand.vmem [shape: f32[2,1,32], index: 9, kind: input, shape index: {}, may-alias: {3,7,9,13}]   ;;  %s2182_s10 = inlined_call_operand.vmem [shape: bf16[2,32,128], index: 10, kind: input, shape index: {}]   ;;  %s2183_s11 = inlined_call_operand.vmem [shape: f32[2,1,128], index: 11, kind: input, shape index: {}]   ;;  %s2184_s12 = inlined_call_operand.vmem [shape: bf16[2,128,32], index: 12, kind: input, shape index: {}]   ;;  %s2185_s13 = inlined_call_operand.vmem [shape: f32[2,1,32], index: 13, kind: input, shape index: {}, may-alias: {3,7,9,13}]   ;;  %s2186_s14 = inlined_call_operand.vmem [shape: f32[1,32], index: 14, kind: input, shape index: {}]   ;;  %s2187_s15 = inlined_call_operand.vmem [shape: f32[1,32], index: 15, kind: input, shape index: {}]   ;;  %s2188_s16 = inlined_call_operand.vmem [shape: bf16[32,128], index: 16, kind: input, shape index: {}]   ;;  %s2189_s17 = inlined_call_operand.hbm [shape: f32[2,8,128], index: 17, kind: output, shape index: {}]  }
   0x1   :  { %2192 = sst [smem:[#allocation5_spill]] %s2172_s0 }
   0x2   :  { %2193 = sst [smem:[#allocation6_spill]] %s2173_s1 }
   0x3   :  { %s2194_s26 = sld [smem:[#allocation5_spill]]  ;;  %vm64_vm0 = vcmask 261120  }
   0x9   :  { %v1845_v0 = vld [vmem:[%s2194_s26] sm:$0xff]  ;;  %v1852_v2 = vld [vmem:[%s2194_s26 + $0x8] sm:$0xff] }
   0xa   :  { %v65_v1 = vsel %vm64_vm0, %v1845_v0, 0.0  ;;  %v68_v3 = vsel %vm64_vm0, %v1852_v2, 0.0 }
   0xb   :  { %66 = vadd.xlane.f32.xlu0 %v65_v1 }
   0xc   :  { %22 = vsyncpa [#allocation3], 0  ;;  %v1743_v4 = vmov 32.0   ;;  %v1599_v21 = vld [vmem:[%s2176_s4 + $0x8] sm:$0xff]  ;;  %v1598_v23 = vld [vmem:[%s2176_s4] sm:$0xff]  ;;  %s1744_s24 = smov 80  }
   0xd   :  { %1655 = vrcp.f32 %v1743_v4  ;;  %156 = vmatpush.bf16.msra.mxu0 %v1599_v21  ;;  %v1637_v42 = vld [vmem:[%s2174_s2] ss:$0 sm:$0xff]  ;;  %s1745_s25 = smov 112   ;;  %s1746_s26 = smov 96   ;;  %vm173_vm8 = vcmask 130048   ;;  %vm227_vm9 = vcmask 64512  }
   0xe   :  { %v1638_v47 = vld [vmem:[%s2175_s3] ss:$0 sm:$0xff]  ;;  %s2195_s29 = sld [smem:[#allocation6_spill]]  ;;  %s1747_s18 = smov 64   ;;  %vm262_vm10 = vcmask 1043456  }
   0xf   :  { %v1639_v52 = vld [vmem:[%s2177_s5] ss:$0 sm:$0xff]  ;;  %s1748_s19 = smov 48   ;;  %s1751_s0 = smov 8  }
  0x11   :  { %157 = vmatpush.bf16.msra.mxu0 %v1598_v23 }
  0x13   :  { %69 = vadd.xlane.f32.xlu0 %v68_v3  ;;  %v1656_v5 = vpop.eup %1655 }
  0x14   :  { %v72_v6 = vmul.f32 32.0, %v1656_v5  ;;  %vm76_vm1 = vweird.f32 %v1656_v5  ;;  %v1899_v3 = vld [vmem:[%s2195_s29 + $0x8] sm:$0xff] }
  0x16   :  { %v73_v7 = vsub.f32 1.0, %v72_v6 }
  0x18   :  { %v74_v8 = vmul.f32 %v1656_v5, %v73_v7 }
  0x1a   :  { %v75_v9 = vadd.f32 %v1656_v5, %v74_v8 }
  0x1c   :  { %v1856_v10 = vsel %vm76_vm1, %v1656_v5, %v75_v9  ;;  %v1904_v5 = vld [vmem:[%s2195_s29] sm:$0xff] }
  0x7e   :  { %v67_v11 = vpop.xlane.xlu0 %66 }
  0x7f   :  { %v78_v12 = vmul.f32 %v1856_v10, %v67_v11 }
  0x81   :  { %v80_v13 = vsub.f32 %v1845_v0, %v78_v12 }
  0x83   :  { %v82_v14 = vmul.f32 %v80_v13, %v80_v13 }
  0x85   :  { %v84_v15 = vsel %vm64_vm0, %v82_v14, 0.0 }
  0x86   :  { %85 = vadd.xlane.f32.xlu1 %v84_v15  ;;  %v70_v16 = vpop.xlane.xlu0 %69 }
  0x87   :  { %v79_v17 = vmul.f32 %v1856_v10, %v70_v16 }
  0x89   :  { %v81_v18 = vsub.f32 %v1852_v2, %v79_v17 }
  0x8b   :  { %v83_v19 = vmul.f32 %v81_v18, %v81_v18 }
  0x8d   :  { %v87_v20 = vsel %vm64_vm0, %v83_v19, 0.0 }
  0x8e   :  { %88 = vadd.xlane.f32.xlu1 %v87_v20 }
  0xf9   :  { %v86_v22 = vpop.xlane.xlu1 %85 }
  0xfa   :  { %v90_v24 = vmul.f32 %v86_v22, %v1856_v10 }
  0xfc   :  { %v92_v25 = vadd.f32 1e-05, %v90_v24 }
  0xfe   :  { %1657 = vrsqrt.f32 %v92_v25  ;;  %vm100_vm3 = vweird.f32 %v92_v25 }
 0x101   :  { %v89_v26 = vpop.xlane.xlu1 %88 }
 0x102   :  { %v91_v27 = vmul.f32 %v89_v26, %v1856_v10 }
 0x104   :  { %v1658_v28 = vpop.eup %1657  ;;  %v93_v29 = vadd.f32 1e-05, %v91_v27 }
 0x105   :  { %v95_v30 = vmul.f32 %v1658_v28, %v92_v25  ;;  %vm101_vm2 = vweird.f32 %v1658_v28 }
 0x106   :  { %1659 = vrsqrt.f32 %v93_v29  ;;  %vm102_vm4 = vmor %vm100_vm3, %vm101_vm2  ;;  %vm110_vm6 = vweird.f32 %v93_v29 }
 0x107   :  { %v96_v31 = vmul.f32 %v1658_v28, %v95_v30 }
 0x109   :  { %v97_v32 = vmul.f32 0.5, %v96_v31 }
 0x10b   :  { %v98_v33 = vsub.f32 1.5, %v97_v32 }
 0x10c   :  { %v1660_v34 = vpop.eup %1659 }
 0x10d   :  { %v99_v35 = vmul.f32 %v1658_v28, %v98_v33  ;;  %v105_v36 = vmul.f32 %v1660_v34, %v93_v29  ;;  %vm111_vm5 = vweird.f32 %v1660_v34 }
 0x10e   :  { %vm112_vm7 = vmor %vm110_vm6, %vm111_vm5 }
 0x10f   :  { %v106_v37 = vmul.f32 %v1660_v34, %v105_v36  ;;  %v103_v38 = vsel %vm102_vm4, %v1658_v28, %v99_v35 }
 0x110   :  { %v114_v41 = vmul.f32 %v103_v38, %v80_v13 }
 0x111   :  { %v107_v39 = vmul.f32 0.5, %v106_v37 }
 0x112   :  { %v119_v46 = vmul.f32 %v1637_v42, %v114_v41 }
 0x113   :  { %v108_v40 = vsub.f32 1.5, %v107_v39 }
 0x114   :  { %v124_v49 = vadd.f32 %v1638_v47, %v119_v46 }
 0x115   :  { %v109_v43 = vmul.f32 %v1660_v34, %v108_v40 }
 0x117   :  { %v113_v44 = vsel %vm112_vm7, %v1660_v34, %v109_v43 }
 0x118   :  { %v115_v45 = vmul.f32 %v113_v44, %v81_v18 }
 0x11a   :  { %v120_v48 = vmul.f32 %v1637_v42, %v115_v45 }
 0x11c   :  { %v125_v50 = vadd.f32 %v1638_v47, %v120_v48 }
 0x11e   :  { %v126_v51 = vpack.c.bf16 %v125_v50, %v124_v49 }
 0x120   :  { %1417 = vmatmul.msk.bf16.vlgmr.msra.gmra.mxu0 %vm64_vm0, %v126_v51 }
 0x19d   :  { %v159_v53 = vpop.f32.mrf.mxu0 }
 0x19e   :  { %v160_v54 = vadd.f32 %v1639_v52, %v159_v53 }
 0x1a0   :  { %306 = vrot.lane.b32.xlu0 %v160_v54, %s1744_s24  ;;  %v164_v55 = vmul.f32 0.25, %v160_v54  ;;  %v252_v18 = vpack.c.bf16 %v160_v54, %v160_v54 }
 0x1a2   :  { %304 = vrot.lane.b32.xlu1 %v164_v55, %s1745_s25  ;;  %v255_v19 = vunpack.c.l.b16 %v252_v18 }
 0x1a4   :  { %v256_v20 = vpack.c.b16 %v255_v19, %v255_v19 }
 0x1a5   :  { %v161_v56 = vpop.f32.mrf.mxu0 }
 0x1a6   :  { %v162_v57 = vadd.f32 %v1639_v52, %v161_v56 }
 0x1a8   :  { %200 = vrot.lane.b32.xlu2 %v162_v57, %s1746_s26  ;;  %v165_v58 = vmul.f32 0.25, %v162_v57  ;;  %v253_v21 = vpack.c.bf16 %v162_v57, %v162_v57 }
 0x1aa   :  { %v280_v22 = vunpack.c.l.b16 %v253_v21 }
 0x1ac   :  { %v281_v23 = vpack.c.b16 %v280_v22, %v280_v22 }
 0x1b0   :  { %171 = vrot.lane.b32.xlu2 %v160_v54, %s1746_s26 }
 0x1b8   :  { %334 = vrot.lane.b32.xlu2 %v162_v57, %s1744_s24 }
 0x1c0   :  { %332 = vrot.lane.b32.xlu2 %v165_v58, %s1745_s25 }
 0x202   :  { %v201_v59 = vpop.permute.xlu2 %200 }
 0x203   :  { %1420 = vmatpush.xpose.msk.msra.mxu2 %vm173_vm8, %v201_v59 }
 0x206   :  { %1421 = vmatmul.msk.f32.vlgmr.msra.gmra.mxu2 %vm173_vm8, %v165_v58 }
 0x20a   :  { %v172_v60 = vpop.permute.xlu2 %171 }
 0x20b   :  { %1418 = vmatpush.xpose.msk.msra.mxu1 %vm173_vm8, %v172_v60 }
 0x20e   :  { %1419 = vmatmul.msk.f32.vlgmr.msra.gmra.mxu1 %vm173_vm8, %v164_v55 }
 0x212   :  { %v307_v61 = vpop.permute.xlu0 %306  ;;  %v335_v62 = vpop.permute.xlu2 %334 }
 0x213   :  { %1424 = vmatpush.xpose.msk.msrb.mxu2 %vm173_vm8, %v307_v61 }
 0x214   :  { %v305_v63 = vpop.permute.xlu1 %304 }
 0x216   :  { %1425 = vmatmul.msk.f32.vlgmr.msrb.gmra.mxu2 %vm173_vm8, %v305_v63 }
 0x217   :  { %1426 = vmatpush.xpose.msk.msra.mxu2 %vm173_vm8, %v335_v62 }
 0x21a   :  { %v333_v1 = vpop.permute.xlu2 %332 }
 0x21e   :  { %1427 = vmatmul.msk.f32.vlgmr.msra.gmra.mxu2 %vm173_vm8, %v333_v1 }
 0x289   :  { %v224_v4 = vpop.f32.mrf.mxu2 }
 0x28a   :  { %v225_v6 = vadd.f32 %v224_v4, %v1899_v3 }
 0x28b   :  { %v196_v7 = vpop.f32.mrf.mxu1 }
 0x28c   :  { %v197_v8 = vadd.f32 %v196_v7, %v1904_v5  ;;  %v231_v9 = vsel %vm227_vm9, %v225_v6, -inf }
 0x28d   :  { %232 = vmax.xlane.f32.xlu0 %v231_v9 }
 0x28e   :  { %v228_v11 = vsel %vm227_vm9, %v197_v8, -inf }
 0x28f   :  { %229 = vmax.xlane.f32.xlu2 %v228_v11  ;;  %v1601_v11 = vld [vmem:[%s2178_s6 + $0x8] sm:$0xff] }
 0x299   :  { %v329_v12 = vpop.f32.mrf.mxu2 }
 0x29a   :  { %v330_v13 = vadd.f32 %v329_v12, %v1904_v5 }
 0x29c   :  { %v360_v14 = vsel %vm227_vm9, %v330_v13, -inf }
 0x29d   :  { %361 = vmax.xlane.f32.xlu1 %v360_v14 }
 0x2a1   :  { %v357_v15 = vpop.f32.mrf.mxu2 }
 0x2a2   :  { %v358_v16 = vadd.f32 %v357_v15, %v1899_v3 }
 0x2a4   :  { %v363_v17 = vsel %vm227_vm9, %v358_v16, -inf }
 0x2a5   :  { %364 = vmax.xlane.f32.xlu2 %v363_v17 }
 0x2bd   :  { %257 = vrot.lane.b32.xlu2 %v256_v20, %s1747_s18 }
 0x2c5   :  { %405 = vrot.lane.b32.xlu2 %v281_v23, %s1748_s19 }
 0x300   :  { %v233_v24 = vpop.xlane.xlu0 %232 }
 0x301   :  { %v235_v25 = vsub.f32 %v225_v6, %v233_v24  ;;  %v1640_v24 = vld [vmem:[%s2179_s7] ss:$0 sm:$0xff] }
 0x302   :  { %v230_v26 = vpop.xlane.xlu2 %229 }
 0x303   :  { %v238_v27 = vmul.f32 1.442695, %v235_v25  ;;  %v234_v28 = vsub.f32 %v197_v8, %v230_v26  ;;  %v1600_v8 = vld [vmem:[%s2178_s6] sm:$0xff] }
 0x305   :  { %1661 = vpow2.f32 %v238_v27  ;;  %v236_v29 = vmul.f32 1.442695, %v234_v28 }
 0x307   :  { %1663 = vpow2.f32 %v236_v29 }
 0x30b   :  { %v1662_v30 = vpop.eup %1661 }
 0x30c   :  { %v243_v31 = vsel %vm227_vm9, %v1662_v30, 0.0 }
 0x30d   :  { %v1664_v32 = vpop.eup %1663  ;;  %244 = vadd.xlane.f32.xlu1 %v243_v31 }
 0x30e   :  { %v240_v33 = vsel %vm227_vm9, %v1664_v32, 0.0 }
 0x30f   :  { %241 = vadd.xlane.f32.xlu0 %v240_v33 }
 0x310   :  { %v362_v34 = vpop.xlane.xlu1 %361 }
 0x311   :  { %v366_v35 = vsub.f32 %v330_v13, %v362_v34 }
 0x313   :  { %v368_v36 = vmul.f32 1.442695, %v366_v35 }
 0x315   :  { %1665 = vpow2.f32 %v368_v36 }
 0x318   :  { %v365_v37 = vpop.xlane.xlu2 %364 }
 0x319   :  { %v367_v38 = vsub.f32 %v358_v16, %v365_v37 }
 0x31b   :  { %v1666_v39 = vpop.eup %1665  ;;  %v370_v40 = vmul.f32 1.442695, %v367_v38 }
 0x31c   :  { %v372_v41 = vsel %vm227_vm9, %v1666_v39, 0.0 }
 0x31d   :  { %1667 = vpow2.f32 %v370_v40  ;;  %373 = vadd.xlane.f32.xlu0 %v372_v41 }
 0x320   :  { %v258_v42 = vpop.permute.xlu2 %257 }
 0x321   :  { %v264_v43 = vsel %vm262_vm10, %v258_v42, 0  ;;  %v1603_v42 = vld [vmem:[%s2182_s10 + $0x8] sm:$0xff] }
 0x322   :  { %273 = vmatpush.bf16.msra.mxu3 %v264_v43 }
 0x323   :  { %v1668_v44 = vpop.eup %1667 }
 0x324   :  { %v375_v45 = vsel %vm227_vm9, %v1668_v44, 0.0 }
 0x325   :  { %376 = vadd.xlane.f32.xlu1 %v375_v45  ;;  %v1602_v45 = vld [vmem:[%s2182_s10] sm:$0xff] }
 0x328   :  { %v406_v46 = vpop.permute.xlu2 %405 }
 0x329   :  { %v411_v47 = vsel %vm262_vm10, %v406_v46, 0 }
 0x32a   :  { %420 = vmatpush.bf16.msrb.mxu2 %v411_v47 }
 0x32e   :  { %466 = vmatpush.bf16.msra.mxu2 %v1600_v8 }
 0x331   :  { %282 = vrot.lane.b32.xlu0 %v281_v23, %s1747_s18 }
 0x33e   :  { %384 = vrot.lane.b32.xlu1 %v256_v20, %s1748_s19 }
 0x380   :  { %v245_v52 = vpop.xlane.xlu1 %244 }
 0x382   :  { %v242_v48 = vpop.xlane.xlu0 %241 }
 0x383   :  { %1669 = vrcp.f32 %v242_v48 }
 0x384   :  { %1671 = vrcp.f32 %v245_v52 }
 0x389   :  { %v1670_v49 = vpop.eup %1669 }
 0x38a   :  { %v248_v50 = vmul.f32 %v1670_v49, %v1664_v32  ;;  %v1672_v55 = vpop.eup %1671 }
 0x38b   :  { %v249_v58 = vmul.f32 %v1672_v55, %v1662_v30 }
 0x38c   :  { %v250_v51 = vpack.c.bf16 %v248_v50, %v248_v50 }
 0x38d   :  { %v251_v62 = vpack.c.bf16 %v249_v58, %v249_v58 }
 0x38e   :  { %1422 = vmatmul.msk.bf16.vlgmr.msra.gmra.mxu3 %vm227_vm9, %v250_v51 }
 0x390   :  { %v374_v54 = vpop.xlane.xlu0 %373 }
 0x398   :  { %v377_v53 = vpop.xlane.xlu1 %376 }
 0x399   :  { %1673 = vrcp.f32 %v377_v53 }
 0x39a   :  { %1675 = vrcp.f32 %v374_v54 }
 0x39f   :  { %v1674_v56 = vpop.eup %1673 }
 0x3a0   :  { %v381_v57 = vmul.f32 %v1674_v56, %v1668_v44  ;;  %v1676_v63 = vpop.eup %1675 }
 0x3a1   :  { %v380_v1 = vmul.f32 %v1676_v63, %v1666_v39 }
 0x3a2   :  { %v383_v59 = vpack.c.bf16 %v381_v57, %v381_v57 }
 0x3a3   :  { %v283_v60 = vpop.permute.xlu0 %282  ;;  %v382_v7 = vpack.c.bf16 %v380_v1, %v380_v1 }
 0x3a4   :  { %1429 = vmatmul.msk.bf16.vlgmr.msrb.gmra.mxu2 %vm227_vm9, %v383_v59  ;;  %v288_v61 = vsel %vm262_vm10, %v283_v60, 0 }
 0x3a5   :  { %297 = vmatpush.bf16.msrb.mxu1 %v288_v61 }
 0x3a8   :  { %1423 = vmatmul.msk.bf16.vlgmr.msrb.gmra.mxu1 %vm227_vm9, %v251_v62  ;;  %v1641_v62 = vld [vmem:[%s2180_s8] ss:$0 sm:$0xff] }
 0x3a9   :  { %443 = vmatpush.bf16.msra.mxu1 %v1601_v11 }
 0x3b0   :  { %v385_v4 = vpop.permute.xlu1 %384 }
 0x3b1   :  { %v390_v6 = vsel %vm262_vm10, %v385_v4, 0 }
 0x3b2   :  { %399 = vmatpush.bf16.msrb.mxu3 %v390_v6  ;;  %v1642_v6 = vld [vmem:[%s2181_s9] ss:$0 sm:$0xff] }
 0x3b5   :  { %1428 = vmatmul.msk.bf16.vlgmr.msrb.gmra.mxu3 %vm227_vm9, %v382_v7 }
 0x3b6   :  { %567 = vmatpush.bf16.msra.mxu3 %v1603_v42 }
 0x3ba   :  { %568 = vmatpush.bf16.msra.mxu3 %v1602_v45 }
 0x411   :  { %v275_v9 = vpop.f32.mrf.mxu3 }
 0x419   :  { %v277_v12 = vpop.f32.mrf.mxu3 }
 0x425   :  { %v299_v13 = vpop.f32.mrf.mxu1 }
 0x426   :  { %v303_v14 = vpack.c.bf16 %v299_v13, %v275_v9 }
 0x427   :  { %v422_v15 = vpop.f32.mrf.mxu2 }
 0x428   :  { %1439 = vmatmul.msk.bf16.vlgmr.msra.gmra.mxu2 %vm173_vm8, %v303_v14  ;;  %v1611_v14 = vld [vmem:[%s2184_s12 + $0x38] sm:$0xff] }
 0x429   :  { %658 = vmatpush.bf16.msrb.mxu0 %v1611_v14 }
 0x42d   :  { %v301_v16 = vpop.f32.mrf.mxu1 }
 0x42e   :  { %v1609_v16 = vld [vmem:[%s2184_s12 + $0x28] sm:$0xff] }
 0x42f   :  { %v424_v17 = vpop.f32.mrf.mxu2 }
 0x430   :  { %v1608_v17 = vld [vmem:[%s2184_s12 + $0x20] sm:$0xff] }
 0x438   :  { %v401_v18 = vpop.f32.mrf.mxu3 }
 0x439   :  { %v426_v19 = vpack.c.bf16 %v422_v15, %v401_v18  ;;  %v1610_v15 = vld [vmem:[%s2184_s12 + $0x30] sm:$0xff]  ;;  %v1607_v18 = vld [vmem:[%s2184_s12 + $0x18] sm:$0xff] }
 0x43a   :  { %659 = vmatpush.bf16.msrb.mxu0 %v1610_v15 }
 0x43b   :  { %1434 = vmatmul.msk.bf16.vlgmr.msra.gmra.mxu1 %vm173_vm8, %v426_v19  ;;  %v1606_v19 = vld [vmem:[%s2184_s12 + $0x10] sm:$0xff] }
 0x43e   :  { %660 = vmatpush.bf16.msrb.mxu0 %v1609_v16 }
 0x440   :  { %v403_v20 = vpop.f32.mrf.mxu3 }
 0x441   :  { %v1605_v20 = vld [vmem:[%s2184_s12 + $0x8] sm:$0xff] }
 0x442   :  { %661 = vmatpush.bf16.msrb.mxu0 %v1608_v17 }
 0x446   :  { %662 = vmatpush.bf16.msrb.mxu0 %v1607_v18 }
 0x44a   :  { %663 = vmatpush.bf16.msrb.mxu0 %v1606_v19 }
 0x44e   :  { %664 = vmatpush.bf16.msrb.mxu0 %v1605_v20 }
 0x4ab   :  { %v468_v21 = vpop.f32.mrf.mxu2 }
 0x4b3   :  { %v470_v28 = vpop.f32.mrf.mxu2 }
 0x4b8   :  { %v445_v22 = vpop.f32.mrf.mxu1 }
 0x4b9   :  { %v469_v23 = vadd.f32 %v468_v21, %v445_v22  ;;  %v1604_v21 = vld [vmem:[%s2184_s12] sm:$0xff] }
 0x4ba   :  { %v1643_v22 = vld [vmem:[%s2183_s11] ss:$0 sm:$0xff]  ;;  %665 = vmatpush.bf16.msrb.mxu0 %v1604_v21 }
 0x4bb   :  { %v473_v25 = vadd.f32 %v469_v23, %v1845_v0 }
 0x4bd   :  { %v1942_v26 = vadd.f32 %v1640_v24, %v473_v25 }
 0x4bf   :  { %v483_v27 = vsel %vm64_vm0, %v1942_v26, 0.0 }
 0x4c0   :  { %v447_v29 = vpop.f32.mrf.mxu1  ;;  %484 = vadd.xlane.f32.xlu2 %v483_v27 }
 0x4c1   :  { %v471_v30 = vadd.f32 %v470_v28, %v447_v29 }
 0x4c3   :  { %v474_v31 = vadd.f32 %v471_v30, %v1852_v2 }
 0x4c5   :  { %v1947_v32 = vadd.f32 %v1640_v24, %v474_v31 }
 0x4c7   :  { %v486_v33 = vsel %vm64_vm0, %v1947_v32, 0.0 }
 0x4c8   :  { %487 = vadd.xlane.f32.xlu0 %v486_v33 }
 0x533   :  { %v485_v34 = vpop.xlane.xlu2 %484 }
 0x534   :  { %v489_v0 = vmul.f32 %v485_v34, %v1856_v10 }
 0x536   :  { %v491_v35 = vsub.f32 %v1942_v26, %v489_v0 }
 0x538   :  { %v493_v36 = vmul.f32 %v491_v35, %v491_v35 }
 0x53a   :  { %v495_v37 = vsel %vm64_vm0, %v493_v36, 0.0 }
 0x53b   :  { %v488_v38 = vpop.xlane.xlu0 %487  ;;  %496 = vadd.xlane.f32.xlu1 %v495_v37 }
 0x53c   :  { %v490_v39 = vmul.f32 %v488_v38, %v1856_v10 }
 0x53e   :  { %v492_v2 = vsub.f32 %v1947_v32, %v490_v39 }
 0x540   :  { %v494_v40 = vmul.f32 %v492_v2, %v492_v2 }
 0x542   :  { %v498_v41 = vsel %vm64_vm0, %v494_v40, 0.0 }
 0x543   :  { %499 = vadd.xlane.f32.xlu2 %v498_v41 }
 0x5ae   :  { %v497_v43 = vpop.xlane.xlu1 %496 }
 0x5af   :  { %v501_v44 = vmul.f32 %v497_v43, %v1856_v10 }
 0x5b1   :  { %v503_v46 = vadd.f32 1e-05, %v501_v44 }
 0x5b3   :  { %1677 = vrsqrt.f32 %v503_v46  ;;  %vm511_vm12 = vweird.f32 %v503_v46 }
 0x5b6   :  { %v500_v47 = vpop.xlane.xlu2 %499 }
 0x5b7   :  { %v502_v48 = vmul.f32 %v500_v47, %v1856_v10 }
 0x5b9   :  { %v1678_v49 = vpop.eup %1677  ;;  %v504_v50 = vadd.f32 1e-05, %v502_v48 }
 0x5ba   :  { %v506_v51 = vmul.f32 %v1678_v49, %v503_v46  ;;  %vm512_vm11 = vweird.f32 %v1678_v49  ;;  %v1644_v46 = vld [vmem:[%s2185_s13] ss:$0 sm:$0xff] }
 0x5bb   :  { %1679 = vrsqrt.f32 %v504_v50  ;;  %vm513_vm13 = vmor %vm511_vm12, %vm512_vm11  ;;  %vm521_vm15 = vweird.f32 %v504_v50 }
 0x5bc   :  { %v507_v52 = vmul.f32 %v1678_v49, %v506_v51 }
 0x5be   :  { %v508_v53 = vmul.f32 0.5, %v507_v52 }
 0x5c0   :  { %v509_v54 = vsub.f32 1.5, %v508_v53 }
 0x5c1   :  { %v1680_v55 = vpop.eup %1679 }
 0x5c2   :  { %v510_v56 = vmul.f32 %v1678_v49, %v509_v54  ;;  %v516_v57 = vmul.f32 %v1680_v55, %v504_v50  ;;  %vm522_vm14 = vweird.f32 %v1680_v55 }
 0x5c3   :  { %vm523_vm1 = vmor %vm521_vm15, %vm522_vm14 }
 0x5c4   :  { %v517_v58 = vmul.f32 %v1680_v55, %v516_v57  ;;  %v514_v59 = vsel %vm513_vm13, %v1678_v49, %v510_v56 }
 0x5c5   :  { %v525_v63 = vmul.f32 %v514_v59, %v491_v35 }
 0x5c6   :  { %v518_v60 = vmul.f32 0.5, %v517_v58 }
 0x5c7   :  { %v530_v7 = vmul.f32 %v1641_v62, %v525_v63  ;;  %v1613_v63 = vld [vmem:[%s2176_s4 + $0x18] sm:$0xff] }
 0x5c8   :  { %v519_v61 = vsub.f32 1.5, %v518_v60  ;;  %770 = vmatpush.bf16.msrb.mxu1 %v1613_v63 }
 0x5c9   :  { %v535_v11 = vadd.f32 %v1642_v6, %v530_v7 }
 0x5ca   :  { %v520_v1 = vmul.f32 %v1680_v55, %v519_v61 }
 0x5cc   :  { %v524_v4 = vsel %vm523_vm1, %v1680_v55, %v520_v1 }
 0x5cd   :  { %v526_v8 = vmul.f32 %v524_v4, %v492_v2 }
 0x5cf   :  { %v531_v9 = vmul.f32 %v1641_v62, %v526_v8 }
 0x5d1   :  { %v536_v12 = vadd.f32 %v1642_v6, %v531_v9  ;;  %v1612_v6 = vld [vmem:[%s2176_s4 + $0x10] sm:$0xff]  ;;  %s1397_s4 = sshll.u32 %s2189_s17, 4  ;;  %s1398_s4 = int_to_ptr.hbm [resolvable:$true] %s1397_s4 }
 0x5d2   :  { %771 = vmatpush.bf16.msrb.mxu1 %v1612_v6 }
 0x5d3   :  { %v537_v13 = vpack.c.bf16 %v536_v12, %v535_v11 }
 0x5d5   :  { %1448 = vmatmul.msk.bf16.vlgmr.msra.gmra.mxu3 %vm64_vm0, %v537_v13 }
 0x658   :  { %v570_v23 = vpop.f32.mrf.mxu3 }
 0x659   :  { %v571_v24 = vadd.f32 %v1643_v22, %v570_v23 }
 0x65b   :  { %v577_v25 = vmul.f32 0.044715, %v571_v24  ;;  %v575_v40 = vmul.f32 0.5, %v571_v24 }
 0x65d   :  { %v579_v27 = vmul.f32 %v577_v25, %v571_v24 }
 0x65f   :  { %v581_v28 = vmul.f32 %v579_v27, %v571_v24 }
 0x660   :  { %v572_v29 = vpop.f32.mrf.mxu3 }
 0x661   :  { %v573_v30 = vadd.f32 %v1643_v22, %v572_v29  ;;  %v583_v31 = vadd.f32 %v581_v28, %v571_v24  ;;  %v1645_v24 = vld [vmem:[%s2174_s2 + $0x1] ss:$0 sm:$0xff] }
 0x662   :  { %v1646_v29 = vld [vmem:[%s2175_s3 + $0x1] ss:$0 sm:$0xff] }
 0x663   :  { %v578_v33 = vmul.f32 0.044715, %v573_v30  ;;  %v585_v0 = vmul.f32 0.7978846, %v583_v31  ;;  %v576_v41 = vmul.f32 0.5, %v573_v30 }
 0x665   :  { %v580_v34 = vmul.f32 %v578_v33, %v573_v30  ;;  %1681 = vtanh.f32 %v585_v0 }
 0x667   :  { %v582_v35 = vmul.f32 %v580_v34, %v573_v30 }
 0x669   :  { %v584_v36 = vadd.f32 %v582_v35, %v573_v30 }
 0x66b   :  { %v586_v37 = vmul.f32 0.7978846, %v584_v36  ;;  %v1682_v38 = vpop.eup %1681  ;;  %v1647_v36 = vld [vmem:[%s2177_s5 + $0x1] ss:$0 sm:$0xff] }
 0x66c   :  { %v589_v39 = vadd.f32 1.0, %v1682_v38 }
 0x66d   :  { %1683 = vtanh.f32 %v586_v37 }
 0x66e   :  { %v591_v43 = vmul.f32 %v589_v39, %v575_v40 }
 0x673   :  { %v1684_v2 = vpop.eup %1683 }
 0x674   :  { %v590_v42 = vadd.f32 1.0, %v1684_v2 }
 0x676   :  { %v592_v44 = vmul.f32 %v590_v42, %v576_v41 }
 0x678   :  { %v593_v45 = vpack.c.bf16 %v592_v44, %v591_v43 }
 0x67a   :  { %666 = vmatmul.bf16.vlgmr.msrb.gmra.mxu0 %v593_v45 }
 0x6f7   :  { %v667_v47 = vpop.f32.mrf.mxu0 }
 0x6f8   :  { %v672_v48 = vadd.f32 %v667_v47, %v1942_v26 }
 0x6fa   :  { %v2003_v49 = vadd.f32 %v1644_v46, %v672_v48 }
 0x6fc   :  { %v684_v50 = vsel %vm64_vm0, %v2003_v49, 0.0 }
 0x6fd   :  { %685 = vadd.xlane.f32.xlu0 %v684_v50 }
 0x6ff   :  { %v669_v51 = vpop.f32.mrf.mxu0 }
 0x700   :  { %v673_v52 = vadd.f32 %v669_v51, %v1947_v32 }
 0x702   :  { %v2008_v53 = vadd.f32 %v1644_v46, %v673_v52 }
 0x704   :  { %v687_v54 = vsel %vm64_vm0, %v2008_v53, 0.0 }
 0x705   :  { %688 = vadd.xlane.f32.xlu2 %v687_v54 }
 0x770   :  { %v686_v55 = vpop.xlane.xlu0 %685 }
 0x771   :  { %v690_v56 = vmul.f32 %v686_v55, %v1856_v10 }
 0x773   :  { %v692_v26 = vsub.f32 %v2003_v49, %v690_v56 }
 0x775   :  { %v694_v57 = vmul.f32 %v692_v26, %v692_v26 }
 0x777   :  { %v696_v58 = vsel %vm64_vm0, %v694_v57, 0.0 }
 0x778   :  { %697 = vadd.xlane.f32.xlu0 %v696_v58  ;;  %v689_v59 = vpop.xlane.xlu2 %688 }
 0x779   :  { %v691_v60 = vmul.f32 %v689_v59, %v1856_v10 }
 0x77b   :  { %v693_v32 = vsub.f32 %v2008_v53, %v691_v60 }
 0x77d   :  { %v695_v61 = vmul.f32 %v693_v32, %v693_v32 }
 0x77f   :  { %v699_v62 = vsel %vm64_vm0, %v695_v61, 0.0 }
 0x780   :  { %700 = vadd.xlane.f32.xlu1 %v699_v62 }
 0x7eb   :  { %v698_v1 = vpop.xlane.xlu0 %697 }
 0x7ec   :  { %v702_v4 = vmul.f32 %v698_v1, %v1856_v10 }
 0x7ee   :  { %v704_v7 = vadd.f32 1e-05, %v702_v4 }
 0x7f0   :  { %1685 = vrsqrt.f32 %v704_v7  ;;  %vm712_vm3 = vweird.f32 %v704_v7 }
 0x7f3   :  { %v701_v8 = vpop.xlane.xlu1 %700 }
 0x7f4   :  { %v703_v9 = vmul.f32 %v701_v8, %v1856_v10 }
 0x7f6   :  { %v1686_v11 = vpop.eup %1685  ;;  %v705_v12 = vadd.f32 1e-05, %v703_v9 }
 0x7f7   :  { %v707_v13 = vmul.f32 %v1686_v11, %v704_v7  ;;  %vm713_vm2 = vweird.f32 %v1686_v11 }
 0x7f8   :  { %1687 = vrsqrt.f32 %v705_v12  ;;  %vm714_vm4 = vmor %vm712_vm3, %vm713_vm2  ;;  %vm722_vm6 = vweird.f32 %v705_v12 }
 0x7f9   :  { %v708_v14 = vmul.f32 %v1686_v11, %v707_v13 }
 0x7fb   :  { %v709_v15 = vmul.f32 0.5, %v708_v14 }
 0x7fd   :  { %v710_v16 = vsub.f32 1.5, %v709_v15 }
 0x7fe   :  { %v1688_v17 = vpop.eup %1687 }
 0x7ff   :  { %v711_v18 = vmul.f32 %v1686_v11, %v710_v16  ;;  %v717_v19 = vmul.f32 %v1688_v17, %v705_v12  ;;  %vm723_vm5 = vweird.f32 %v1688_v17 }
 0x800   :  { %vm724_vm7 = vmor %vm722_vm6, %vm723_vm5 }
 0x801   :  { %v718_v20 = vmul.f32 %v1688_v17, %v717_v19  ;;  %v715_v21 = vsel %vm714_vm4, %v1686_v11, %v711_v18 }
 0x802   :  { %v726_v25 = vmul.f32 %v715_v21, %v692_v26 }
 0x803   :  { %v719_v22 = vmul.f32 0.5, %v718_v20 }
 0x804   :  { %v731_v30 = vmul.f32 %v1645_v24, %v726_v25 }
 0x805   :  { %v720_v23 = vsub.f32 1.5, %v719_v22 }
 0x806   :  { %v736_v34 = vadd.f32 %v1646_v29, %v731_v30 }
 0x807   :  { %v721_v27 = vmul.f32 %v1688_v17, %v720_v23 }
 0x809   :  { %v725_v28 = vsel %vm724_vm7, %v1688_v17, %v721_v27 }
 0x80a   :  { %v727_v31 = vmul.f32 %v725_v28, %v693_v32 }
 0x80c   :  { %v732_v33 = vmul.f32 %v1645_v24, %v727_v31 }
 0x80e   :  { %v737_v0 = vadd.f32 %v1646_v29, %v732_v33 }
 0x810   :  { %v738_v35 = vpack.c.bf16 %v737_v0, %v736_v34 }
 0x812   :  { %1496 = vmatmul.msk.bf16.vlgmr.msrb.gmra.mxu1 %vm64_vm0, %v738_v35 }
 0x88f   :  { %v773_v37 = vpop.f32.mrf.mxu1 }
 0x890   :  { %v774_v38 = vadd.f32 %v1647_v36, %v773_v37 }
 0x892   :  { %918 = vrot.lane.b32.xlu1 %v774_v38, %s1744_s24  ;;  %786 = vrot.lane.b32.xlu2 %v774_v38, %s1746_s26  ;;  %v778_v41 = vmul.f32 0.25, %v774_v38  ;;  %v865_v32 = vpack.c.bf16 %v774_v38, %v774_v38 }
 0x894   :  { %v868_v61 = vunpack.c.l.b16 %v865_v32 }
 0x896   :  { %v869_v62 = vpack.c.b16 %v868_v61, %v868_v61 }
 0x897   :  { %v775_v39 = vpop.f32.mrf.mxu1 }
 0x898   :  { %v776_v2 = vadd.f32 %v1647_v36, %v775_v39 }
 0x89a   :  { %814 = vrot.lane.b32.xlu0 %v776_v2, %s1746_s26  ;;  %946 = vrot.lane.b32.xlu2 %v776_v2, %s1744_s24  ;;  %v779_v40 = vmul.f32 0.25, %v776_v2  ;;  %v866_v63 = vpack.c.bf16 %v776_v2, %v776_v2 }
 0x89c   :  { %944 = vrot.lane.b32.xlu1 %v779_v40, %s1745_s25  ;;  %v892_v1 = vunpack.c.l.b16 %v866_v63 }
 0x89e   :  { %v893_v4 = vpack.c.b16 %v892_v1, %v892_v1  ;;  %v1648_v1 = vld [vmem:[%s2179_s7 + $0x1] ss:$0 sm:$0xff] }
 0x8a2   :  { %916 = vrot.lane.b32.xlu0 %v778_v41, %s1745_s25 }
 0x8ec   :  { %v787_v42 = vpop.permute.xlu2 %786 }
 0x8ed   :  { %1501 = vmatpush.xpose.msk.msrb.mxu2 %vm173_vm8, %v787_v42 }
 0x8f0   :  { %1502 = vmatmul.msk.f32.vlgmr.msrb.gmra.mxu2 %vm173_vm8, %v778_v41 }
 0x8f4   :  { %v947_v45 = vpop.permute.xlu2 %946 }
 0x904   :  { %v919_v44 = vpop.permute.xlu1 %918 }
 0x90c   :  { %v815_v43 = vpop.permute.xlu0 %814 }
 0x90d   :  { %1503 = vmatpush.xpose.msk.msra.mxu2 %vm173_vm8, %v815_v43 }
 0x90e   :  { %v945_v47 = vpop.permute.xlu1 %944 }
 0x910   :  { %1504 = vmatmul.msk.f32.vlgmr.msra.gmra.mxu2 %vm173_vm8, %v779_v40 }
 0x911   :  { %1507 = vmatpush.xpose.msk.msrb.mxu2 %vm173_vm8, %v919_v44 }
 0x914   :  { %v917_v46 = vpop.permute.xlu0 %916 }
 0x915   :  { %1509 = vmatpush.xpose.msk.msra.mxu2 %vm173_vm8, %v947_v45 }
 0x918   :  { %1508 = vmatmul.msk.f32.vlgmr.msrb.gmra.mxu2 %vm173_vm8, %v917_v46 }
 0x920   :  { %1510 = vmatmul.msk.f32.vlgmr.msra.gmra.mxu2 %vm173_vm8, %v945_v47 }
 0x973   :  { %v810_v48 = vpop.f32.mrf.mxu2 }
 0x974   :  { %v811_v50 = vadd.f32 %v810_v48, %v1904_v5 }
 0x976   :  { %v841_v51 = vsel %vm227_vm9, %v811_v50, -inf }
 0x977   :  { %842 = vmax.xlane.f32.xlu0 %v841_v51  ;;  %v1614_v51 = vld [vmem:[%s2178_s6 + $0x10] sm:$0xff] }
 0x978   :  { %1078 = vmatpush.bf16.msrb.mxu2 %v1614_v51 }
 0x993   :  { %v838_v52 = vpop.f32.mrf.mxu2 }
 0x994   :  { %v839_v54 = vadd.f32 %v838_v52, %v1899_v3 }
 0x996   :  { %v844_v55 = vsel %vm227_vm9, %v839_v54, -inf }
 0x997   :  { %845 = vmax.xlane.f32.xlu2 %v844_v55 }
 0x99b   :  { %v941_v56 = vpop.f32.mrf.mxu2 }
 0x99c   :  { %v942_v26 = vadd.f32 %v941_v56, %v1904_v5 }
 0x99e   :  { %v972_v57 = vsel %vm227_vm9, %v942_v26, -inf }
 0x99f   :  { %973 = vmax.xlane.f32.xlu1 %v972_v57 }
 0x9a3   :  { %v969_v58 = vpop.f32.mrf.mxu2 }
 0x9a4   :  { %v970_v59 = vadd.f32 %v969_v58, %v1899_v3 }
 0x9a6   :  { %v975_v60 = vsel %vm227_vm9, %v970_v59, -inf }
 0x9a7   :  { %976 = vmax.xlane.f32.xlu0 %v975_v60 }
 0x9b8   :  { %870 = vrot.lane.b32.xlu1 %v869_v62, %s1747_s18 }
 0x9c0   :  { %1017 = vrot.lane.b32.xlu1 %v893_v4, %s1748_s19 }
 0x9ea   :  { %v843_v5 = vpop.xlane.xlu0 %842 }
 0x9eb   :  { %v847_v6 = vsub.f32 %v811_v50, %v843_v5 }
 0x9ed   :  { %v849_v7 = vmul.f32 1.442695, %v847_v6 }
 0x9ef   :  { %1689 = vpow2.f32 %v849_v7 }
 0x9f5   :  { %v1690_v8 = vpop.eup %1689 }
 0x9f6   :  { %v853_v3 = vsel %vm227_vm9, %v1690_v8, 0.0 }
 0x9f7   :  { %854 = vadd.xlane.f32.xlu2 %v853_v3 }
 0xa0a   :  { %v846_v9 = vpop.xlane.xlu2 %845 }
 0xa0b   :  { %v848_v11 = vsub.f32 %v839_v54, %v846_v9  ;;  %v1615_v54 = vld [vmem:[%s2178_s6 + $0x18] sm:$0xff] }
 0xa0d   :  { %v851_v12 = vmul.f32 1.442695, %v848_v11 }
 0xa0f   :  { %1691 = vpow2.f32 %v851_v12 }
 0xa12   :  { %v974_v13 = vpop.xlane.xlu1 %973 }
 0xa13   :  { %v978_v14 = vsub.f32 %v942_v26, %v974_v13 }
 0xa15   :  { %v1692_v15 = vpop.eup %1691  ;;  %v980_v16 = vmul.f32 1.442695, %v978_v14 }
 0xa16   :  { %v856_v17 = vsel %vm227_vm9, %v1692_v15, 0.0 }
 0xa17   :  { %1693 = vpow2.f32 %v980_v16  ;;  %857 = vadd.xlane.f32.xlu0 %v856_v17 }
 0xa1a   :  { %v977_v18 = vpop.xlane.xlu0 %976 }
 0xa1b   :  { %v979_v19 = vsub.f32 %v970_v59, %v977_v18 }
 0xa1d   :  { %v1694_v20 = vpop.eup %1693  ;;  %v982_v21 = vmul.f32 1.442695, %v979_v19 }
 0xa1e   :  { %v984_v22 = vsel %vm227_vm9, %v1694_v20, 0.0 }
 0xa1f   :  { %1695 = vpow2.f32 %v982_v21  ;;  %985 = vadd.xlane.f32.xlu2 %v984_v22  ;;  %v1617_v21 = vld [vmem:[%s2182_s10 + $0x18] sm:$0xff] }
 0xa25   :  { %v1696_v23 = vpop.eup %1695 }
 0xa26   :  { %v987_v24 = vsel %vm227_vm9, %v1696_v23, 0.0 }
 0xa27   :  { %988 = vadd.xlane.f32.xlu0 %v987_v24  ;;  %v1616_v24 = vld [vmem:[%s2182_s10 + $0x10] sm:$0xff] }
 0xa2a   :  { %v871_v25 = vpop.permute.xlu1 %870 }
 0xa2b   :  { %v876_v27 = vsel %vm262_vm10, %v871_v25, 0 }
 0xa2c   :  { %885 = vmatpush.bf16.msrb.mxu3 %v876_v27 }
 0xa32   :  { %v1018_v28 = vpop.permute.xlu1 %1017 }
 0xa33   :  { %v1023_v29 = vsel %vm262_vm10, %v1018_v28, 0 }
 0xa34   :  { %1032 = vmatpush.bf16.msra.mxu0 %v1023_v29 }
 0xa37   :  { %894 = vrot.lane.b32.xlu2 %v893_v4, %s1747_s18 }
 0xa3b   :  { %996 = vrot.lane.b32.xlu0 %v869_v62, %s1748_s19 }
 0xa6a   :  { %v855_v30 = vpop.xlane.xlu2 %854 }
 0xa6b   :  { %1697 = vrcp.f32 %v855_v30 }
 0xa71   :  { %v1698_v31 = vpop.eup %1697 }
 0xa72   :  { %v861_v33 = vmul.f32 %v1698_v31, %v1690_v8 }
 0xa74   :  { %v863_v34 = vpack.c.bf16 %v861_v33, %v861_v33 }
 0xa76   :  { %1505 = vmatmul.msk.bf16.vlgmr.msrb.gmra.mxu3 %vm227_vm9, %v863_v34 }
 0xa8a   :  { %v858_v0 = vpop.xlane.xlu0 %857 }
 0xa8b   :  { %1699 = vrcp.f32 %v858_v0 }
 0xa91   :  { %v1700_v36 = vpop.eup %1699 }
 0xa92   :  { %v986_v35 = vpop.xlane.xlu2 %985  ;;  %v862_v37 = vmul.f32 %v1700_v36, %v1692_v15 }
 0xa94   :  { %v864_v40 = vpack.c.bf16 %v862_v37, %v862_v37 }
 0xa9a   :  { %v895_v38 = vpop.permute.xlu2 %894  ;;  %v989_v39 = vpop.xlane.xlu0 %988 }
 0xa9b   :  { %v900_v2 = vsel %vm262_vm10, %v895_v38, 0  ;;  %1701 = vrcp.f32 %v989_v39 }
 0xa9c   :  { %909 = vmatpush.bf16.msra.mxu1 %v900_v2  ;;  %1703 = vrcp.f32 %v986_v35 }
 0xa9f   :  { %1506 = vmatmul.msk.bf16.vlgmr.msra.gmra.mxu1 %vm227_vm9, %v864_v40 }
 0xaa0   :  { %1055 = vmatpush.bf16.msrb.mxu1 %v1615_v54  ;;  %v1625_v54 = vld [vmem:[%s2184_s12 + $0x78] sm:$0xff] }
 0xaa1   :  { %v1702_v41 = vpop.eup %1701  ;;  %1276 = vmatpush.bf16.msrb.mxu0 %v1625_v54 }
 0xaa2   :  { %v993_v42 = vmul.f32 %v1702_v41, %v1696_v23  ;;  %v1704_v44 = vpop.eup %1703  ;;  %v1649_v41 = vld [vmem:[%s2180_s8 + $0x1] ss:$0 sm:$0xff] }
 0xaa3   :  { %v992_v45 = vmul.f32 %v1704_v44, %v1694_v20 }
 0xaa4   :  { %v995_v43 = vpack.c.bf16 %v993_v42, %v993_v42 }
 0xaa5   :  { %v994_v48 = vpack.c.bf16 %v992_v45, %v992_v45  ;;  %v1650_v45 = vld [vmem:[%s2181_s9 + $0x1] ss:$0 sm:$0xff] }
 0xaa6   :  { %1512 = vmatmul.msk.bf16.vlgmr.msra.gmra.mxu0 %vm227_vm9, %v995_v43 }
 0xaad   :  { %v997_v46 = vpop.permute.xlu0 %996 }
 0xaae   :  { %v1002_v47 = vsel %vm262_vm10, %v997_v46, 0 }
 0xaaf   :  { %1011 = vmatpush.bf16.msra.mxu3 %v1002_v47 }
 0xab2   :  { %1511 = vmatmul.msk.bf16.vlgmr.msra.gmra.mxu3 %vm227_vm9, %v994_v48 }
 0xab3   :  { %1184 = vmatpush.bf16.msrb.mxu3 %v1617_v21 }
 0xab7   :  { %1185 = vmatpush.bf16.msrb.mxu3 %v1616_v24 }
 0xaf9   :  { %v887_v50 = vpop.f32.mrf.mxu3 }
 0xb01   :  { %v889_v52 = vpop.f32.mrf.mxu3 }
 0xb1c   :  { %v911_v55 = vpop.f32.mrf.mxu1 }
 0xb1d   :  { %v915_v56 = vpack.c.bf16 %v911_v55, %v887_v50  ;;  %v1624_v55 = vld [vmem:[%s2184_s12 + $0x70] sm:$0xff] }
 0xb1e   :  { %1277 = vmatpush.bf16.msrb.mxu0 %v1624_v55 }
 0xb1f   :  { %1522 = vmatmul.msk.bf16.vlgmr.msrb.gmra.mxu2 %vm173_vm8, %v915_v56  ;;  %v1623_v56 = vld [vmem:[%s2184_s12 + $0x68] sm:$0xff] }
 0xb22   :  { %1278 = vmatpush.bf16.msrb.mxu0 %v1623_v56 }
 0xb23   :  { %v1034_v26 = vpop.f32.mrf.mxu0 }
 0xb24   :  { %v913_v57 = vpop.f32.mrf.mxu1 }
 0xb25   :  { %v1621_v57 = vld [vmem:[%s2184_s12 + $0x58] sm:$0xff] }
 0xb2b   :  { %v1036_v58 = vpop.f32.mrf.mxu0 }
 0xb2c   :  { %v1620_v58 = vld [vmem:[%s2184_s12 + $0x50] sm:$0xff] }
 0xb35   :  { %v1013_v59 = vpop.f32.mrf.mxu3 }
 0xb36   :  { %v1038_v60 = vpack.c.bf16 %v1034_v26, %v1013_v59  ;;  %v1622_v26 = vld [vmem:[%s2184_s12 + $0x60] sm:$0xff]  ;;  %v1619_v59 = vld [vmem:[%s2184_s12 + $0x48] sm:$0xff] }
 0xb37   :  { %1279 = vmatpush.bf16.msrb.mxu0 %v1622_v26 }
 0xb38   :  { %1517 = vmatmul.msk.bf16.vlgmr.msrb.gmra.mxu1 %vm173_vm8, %v1038_v60  ;;  %v1618_v60 = vld [vmem:[%s2184_s12 + $0x40] sm:$0xff] }
 0xb3b   :  { %1280 = vmatpush.bf16.msrb.mxu0 %v1621_v57 }
 0xb3d   :  { %v1015_v32 = vpop.f32.mrf.mxu3 }
 0xb3e   :  { %v1651_v32 = vld [vmem:[%s2183_s11 + $0x1] ss:$0 sm:$0xff] }
 0xb3f   :  { %1281 = vmatpush.bf16.msrb.mxu0 %v1620_v58 }
 0xb43   :  { %1282 = vmatpush.bf16.msrb.mxu0 %v1619_v59 }
 0xb47   :  { %1283 = vmatpush.bf16.msrb.mxu0 %v1618_v60 }
 0xba2   :  { %v1080_v61 = vpop.f32.mrf.mxu2 }
 0xbaa   :  { %v1082_v7 = vpop.f32.mrf.mxu2 }
 0xbb5   :  { %v1057_v62 = vpop.f32.mrf.mxu1 }
 0xbb6   :  { %v1081_v63 = vadd.f32 %v1080_v61, %v1057_v62 }
 0xbb8   :  { %v1085_v4 = vadd.f32 %v1081_v63, %v2003_v49 }
 0xbba   :  { %v2086_v5 = vadd.f32 %v1648_v1, %v1085_v4 }
 0xbbc   :  { %v1098_v6 = vsel %vm64_vm0, %v2086_v5, 0.0 }
 0xbbd   :  { %1099 = vadd.xlane.f32.xlu1 %v1098_v6  ;;  %v1059_v8 = vpop.f32.mrf.mxu1 }
 0xbbe   :  { %v1083_v3 = vadd.f32 %v1082_v7, %v1059_v8 }
 0xbc0   :  { %v1086_v9 = vadd.f32 %v1083_v3, %v2008_v53 }
 0xbc2   :  { %v2091_v11 = vadd.f32 %v1648_v1, %v1086_v9 }
 0xbc4   :  { %v1101_v12 = vsel %vm64_vm0, %v2091_v11, 0.0 }
 0xbc5   :  { %1102 = vadd.xlane.f32.xlu2 %v1101_v12 }
 0xc30   :  { %v1100_v13 = vpop.xlane.xlu1 %1099 }
 0xc31   :  { %v1104_v49 = vmul.f32 %v1100_v13, %v1856_v10 }
 0xc33   :  { %v1106_v14 = vsub.f32 %v2086_v5, %v1104_v49 }
 0xc35   :  { %v1108_v15 = vmul.f32 %v1106_v14, %v1106_v14 }
 0xc37   :  { %v1110_v16 = vsel %vm64_vm0, %v1108_v15, 0.0 }
 0xc38   :  { %1111 = vadd.xlane.f32.xlu0 %v1110_v16  ;;  %v1103_v17 = vpop.xlane.xlu2 %1102 }
 0xc39   :  { %v1105_v18 = vmul.f32 %v1103_v17, %v1856_v10 }
 0xc3b   :  { %v1107_v53 = vsub.f32 %v2091_v11, %v1105_v18 }
 0xc3d   :  { %v1109_v19 = vmul.f32 %v1107_v53, %v1107_v53 }
 0xc3f   :  { %v1113_v20 = vsel %vm64_vm0, %v1109_v19, 0.0 }
 0xc40   :  { %1114 = vadd.xlane.f32.xlu1 %v1113_v20 }
 0xcab   :  { %v1112_v22 = vpop.xlane.xlu0 %1111 }
 0xcac   :  { %v1116_v23 = vmul.f32 %v1112_v22, %v1856_v10 }
 0xcae   :  { %v1118_v25 = vadd.f32 1e-05, %v1116_v23  ;;  %v1652_v23 = vld [vmem:[%s2185_s13 + $0x1] ss:$0 sm:$0xff] }
 0xcb0   :  { %1705 = vrsqrt.f32 %v1118_v25  ;;  %vm1126_vm9 = vweird.f32 %v1118_v25 }
 0xcb3   :  { %v1115_v27 = vpop.xlane.xlu1 %1114 }
 0xcb4   :  { %v1117_v28 = vmul.f32 %v1115_v27, %v1856_v10 }
 0xcb6   :  { %v1706_v29 = vpop.eup %1705  ;;  %v1119_v30 = vadd.f32 1e-05, %v1117_v28 }
 0xcb7   :  { %v1121_v31 = vmul.f32 %v1706_v29, %v1118_v25  ;;  %vm1127_vm8 = vweird.f32 %v1706_v29 }
 0xcb8   :  { %1707 = vrsqrt.f32 %v1119_v30  ;;  %vm1128_vm10 = vmor %vm1126_vm9, %vm1127_vm8  ;;  %vm1136_vm12 = vweird.f32 %v1119_v30 }
 0xcb9   :  { %v1122_v33 = vmul.f32 %v1706_v29, %v1121_v31 }
 0xcbb   :  { %v1123_v34 = vmul.f32 0.5, %v1122_v33 }
 0xcbd   :  { %v1124_v0 = vsub.f32 1.5, %v1123_v34 }
 0xcbe   :  { %v1708_v35 = vpop.eup %1707 }
 0xcbf   :  { %v1125_v36 = vmul.f32 %v1706_v29, %v1124_v0  ;;  %v1131_v37 = vmul.f32 %v1708_v35, %v1119_v30  ;;  %vm1137_vm11 = vweird.f32 %v1708_v35 }
 0xcc0   :  { %vm1138_vm13 = vmor %vm1136_vm12, %vm1137_vm11 }
 0xcc1   :  { %v1132_v38 = vmul.f32 %v1708_v35, %v1131_v37  ;;  %v1129_v39 = vsel %vm1128_vm10, %v1706_v29, %v1125_v36 }
 0xcc2   :  { %v1140_v42 = vmul.f32 %v1129_v39, %v1106_v14 }
 0xcc3   :  { %v1133_v2 = vmul.f32 0.5, %v1132_v38 }
 0xcc4   :  { %v1145_v46 = vmul.f32 %v1649_v41, %v1140_v42 }
 0xcc5   :  { %v1134_v40 = vsub.f32 1.5, %v1133_v2 }
 0xcc6   :  { %v1150_v50 = vadd.f32 %v1650_v45, %v1145_v46 }
 0xcc7   :  { %v1135_v43 = vmul.f32 %v1708_v35, %v1134_v40 }
 0xcc9   :  { %v1139_v44 = vsel %vm1138_vm13, %v1708_v35, %v1135_v43  ;;  %v1626_v43 = vld [vmem:[%s2188_s16] sm:$0xff] }
 0xcca   :  { %v1141_v47 = vmul.f32 %v1139_v44, %v1107_v53 }
 0xccc   :  { %v1146_v48 = vmul.f32 %v1649_v41, %v1141_v47 }
 0xcce   :  { %v1151_v51 = vadd.f32 %v1650_v45, %v1146_v48 }
 0xcd0   :  { %v1152_v52 = vpack.c.bf16 %v1151_v51, %v1150_v50 }
 0xcd2   :  { %1539 = vmatmul.msk.bf16.vlgmr.msrb.gmra.mxu3 %vm64_vm0, %v1152_v52 }
 0xd55   :  { %v1187_v61 = vpop.f32.mrf.mxu3 }
 0xd56   :  { %v1188_v62 = vadd.f32 %v1651_v32, %v1187_v61 }
 0xd58   :  { %v1194_v63 = vmul.f32 0.044715, %v1188_v62  ;;  %v1192_v18 = vmul.f32 0.5, %v1188_v62 }
 0xd5a   :  { %v1196_v1 = vmul.f32 %v1194_v63, %v1188_v62  ;;  %v1654_v63 = vld [vmem:[%s2187_s15] ss:$0 sm:$0xff]  ;;  %s1750_s15 = smov 128  }
 0xd5c   :  { %v1198_v4 = vmul.f32 %v1196_v1, %v1188_v62 }
 0xd5d   :  { %v1189_v6 = vpop.f32.mrf.mxu3 }
 0xd5e   :  { %v1200_v7 = vadd.f32 %v1198_v4, %v1188_v62  ;;  %v1190_v8 = vadd.f32 %v1651_v32, %v1189_v6 }
 0xd60   :  { %v1195_v3 = vmul.f32 0.044715, %v1190_v8  ;;  %v1202_v9 = vmul.f32 0.7978846, %v1200_v7  ;;  %v1193_v53 = vmul.f32 0.5, %v1190_v8 }
 0xd62   :  { %v1197_v12 = vmul.f32 %v1195_v3, %v1190_v8  ;;  %1709 = vtanh.f32 %v1202_v9 }
 0xd64   :  { %v1199_v13 = vmul.f32 %v1197_v12, %v1190_v8 }
 0xd66   :  { %v1201_v49 = vadd.f32 %v1199_v13, %v1190_v8 }
 0xd68   :  { %v1203_v14 = vmul.f32 0.7978846, %v1201_v49  ;;  %v1710_v15 = vpop.eup %1709 }
 0xd69   :  { %v1206_v16 = vadd.f32 1.0, %v1710_v15 }
 0xd6a   :  { %1711 = vtanh.f32 %v1203_v14 }
 0xd6b   :  { %v1208_v20 = vmul.f32 %v1206_v16, %v1192_v18 }
 0xd70   :  { %v1712_v17 = vpop.eup %1711 }
 0xd71   :  { %v1207_v19 = vadd.f32 1.0, %v1712_v17 }
 0xd73   :  { %v1209_v21 = vmul.f32 %v1207_v19, %v1193_v53 }
 0xd75   :  { %v1210_v22 = vpack.c.bf16 %v1209_v21, %v1208_v20 }
 0xd77   :  { %1284 = vmatmul.bf16.vlgmr.msrb.gmra.mxu0 %v1210_v22 }
 0xdf4   :  { %v1285_v24 = vpop.f32.mrf.mxu0 }
 0xdf5   :  { %v1290_v25 = vadd.f32 %v1285_v24, %v2086_v5 }
 0xdf7   :  { %v1297_v27 = vadd.f32 %v1652_v23, %v1290_v25 }
 0xdf9   :  { %v1301_v28 = vsel %vm64_vm0, %v1297_v27, 0.0 }
 0xdfa   :  { %1302 = vadd.xlane.f32.xlu2 %v1301_v28 }
 0xdfc   :  { %v1287_v29 = vpop.f32.mrf.mxu0 }
 0xdfd   :  { %v1291_v30 = vadd.f32 %v1287_v29, %v2091_v11  ;;  %v1627_v11 = vld [vmem:[%s2188_s16 + $0x8] sm:$0xff] }
 0xdfe   :  { %1381 = vmatpush.bf16.msra.mxu1 %v1627_v11 }
 0xdff   :  { %v1298_v31 = vadd.f32 %v1652_v23, %v1291_v30 }
 0xe01   :  { %v1304_v33 = vsel %vm64_vm0, %v1298_v31, 0.0 }
 0xe02   :  { %1305 = vadd.xlane.f32.xlu0 %v1304_v33  ;;  %1382 = vmatpush.bf16.msra.mxu1 %v1626_v43 }
 0xe6d   :  { %v1303_v34 = vpop.xlane.xlu2 %1302 }
 0xe6e   :  { %v1307_v0 = vmul.f32 %v1303_v34, %v1856_v10 }
 0xe70   :  { %v1309_v35 = vsub.f32 %v1297_v27, %v1307_v0 }
 0xe72   :  { %v1311_v36 = vmul.f32 %v1309_v35, %v1309_v35 }
 0xe74   :  { %v1313_v37 = vsel %vm64_vm0, %v1311_v36, 0.0 }
 0xe75   :  { %1314 = vadd.xlane.f32.xlu1 %v1313_v37  ;;  %v1306_v5 = vpop.xlane.xlu0 %1305 }
 0xe76   :  { %v1308_v38 = vmul.f32 %v1306_v5, %v1856_v10 }
 0xe78   :  { %v1310_v39 = vsub.f32 %v1298_v31, %v1308_v38 }
 0xe7a   :  { %v1312_v2 = vmul.f32 %v1310_v39, %v1310_v39 }
 0xe7c   :  { %v1316_v40 = vsel %vm64_vm0, %v1312_v2, 0.0 }
 0xe7d   :  { %1317 = vadd.xlane.f32.xlu2 %v1316_v40 }
 0xee8   :  { %v1315_v41 = vpop.xlane.xlu1 %1314 }
 0xee9   :  { %v1319_v42 = vmul.f32 %v1315_v41, %v1856_v10 }
 0xeeb   :  { %v1321_v44 = vadd.f32 1e-05, %v1319_v42 }
 0xeed   :  { %1713 = vrsqrt.f32 %v1321_v44  ;;  %vm1329_vm15 = vweird.f32 %v1321_v44 }
 0xef0   :  { %v1318_v45 = vpop.xlane.xlu2 %1317 }
 0xef1   :  { %v1320_v46 = vmul.f32 %v1318_v45, %v1856_v10  ;;  %v1653_v10 = vld [vmem:[%s2186_s14] ss:$0 sm:$0xff]  ;;  %s1749_s14 = smov [#allocation2]  }
 0xef2   :  { %s1395_s28 = sshll.u32 %s1749_s14, 4  ;;  %s1396_s28 = int_to_ptr.vmem [resolvable:$true] %s1395_s28 }
 0xef3   :  { %v1714_v47 = vpop.eup %1713  ;;  %v1322_v48 = vadd.f32 1e-05, %v1320_v46 }
 0xef4   :  { %v1324_v50 = vmul.f32 %v1714_v47, %v1321_v44  ;;  %vm1330_vm14 = vweird.f32 %v1714_v47 }
 0xef5   :  { %1715 = vrsqrt.f32 %v1322_v48  ;;  %vm1331_vm1 = vmor %vm1329_vm15, %vm1330_vm14  ;;  %vm1339_vm3 = vweird.f32 %v1322_v48 }
 0xef6   :  { %v1325_v51 = vmul.f32 %v1714_v47, %v1324_v50 }
 0xef8   :  { %v1326_v52 = vmul.f32 0.5, %v1325_v51 }
 0xefa   :  { %v1327_v54 = vsub.f32 1.5, %v1326_v52 }
 0xefb   :  { %v1716_v55 = vpop.eup %1715 }
 0xefc   :  { %v1328_v56 = vmul.f32 %v1714_v47, %v1327_v54  ;;  %v1334_v26 = vmul.f32 %v1716_v55, %v1322_v48  ;;  %vm1340_vm2 = vweird.f32 %v1716_v55 }
 0xefd   :  { %vm1341_vm4 = vmor %vm1339_vm3, %vm1340_vm2 }
 0xefe   :  { %v1335_v57 = vmul.f32 %v1716_v55, %v1334_v26  ;;  %v1332_v58 = vsel %vm1331_vm1, %v1714_v47, %v1328_v56 }
 0xeff   :  { %v1343_v32 = vmul.f32 %v1332_v58, %v1309_v35 }
 0xf00   :  { %v1336_v59 = vmul.f32 0.5, %v1335_v57 }
 0xf01   :  { %v1348_v1 = vmul.f32 %v1653_v10, %v1343_v32 }
 0xf02   :  { %v1337_v60 = vsub.f32 1.5, %v1336_v59 }
 0xf03   :  { %v1353_v7 = vadd.f32 %v1654_v63, %v1348_v1 }
 0xf04   :  { %v1338_v61 = vmul.f32 %v1716_v55, %v1337_v60 }
 0xf06   :  { %v1342_v62 = vsel %vm1341_vm4, %v1716_v55, %v1338_v61 }
 0xf07   :  { %v1344_v4 = vmul.f32 %v1342_v62, %v1310_v39 }
 0xf09   :  { %v1349_v6 = vmul.f32 %v1653_v10, %v1344_v4 }
 0xf0b   :  { %v1354_v8 = vadd.f32 %v1654_v63, %v1349_v6 }
 0xf0d   :  { %v1355_v3 = vpack.c.bf16 %v1354_v8, %v1353_v7 }
 0xf0f   :  { %1597 = vmatmul.msk.bf16.vlgmr.msra.gmra.mxu1 %vm64_vm0, %v1355_v3 }
 0xf8c   :  { %v1384_v9 = vpop.f32.mrf.mxu1 }
 0xf8d   :  { %1389 = vst [vmem:[#allocation2] sm:$0xff] %v1384_v9 }
 0xf94   :  { %v1386_v12 = vpop.f32.mrf.mxu1 }
 0xf95   :  { %1390 = vst [vmem:[#allocation2 + $0x8] sm:$0xff] %v1386_v12 }
 0xf96   :  { %1403 = dma.vmem_to_hbm [thread:$0]  %s1396_s28, 256, %s1398_s4, [#allocation3], %s1750_s15, %s1750_s15, %s1751_s0  }
 0xf97   :  { %1741 = dma.done.wait [#allocation3], 256  }
 0xf98   :  { %1742 = vsyncadd [#allocation3], 4294967040 }
 0xf99   :  { %1408 = vsyncpa [#allocation3], 1 }

</bundles_post_ra>
